<compile_context>
chip_gen: v7x
topology: tpu7x:2x2x1
jax: 0.10.0
libtpu: 0.0.40
codegen_flags: <defaults>
</compile_context>

<pallas_src>
import functools

import jax
import jax.numpy as jnp
import numpy as np
from jax import lax
from jax.experimental import pallas as pl
from jax.experimental.pallas import tpu as pltpu

_LANE = 128


def _silu(x):
    return x * jax.nn.sigmoid(x)


def _round_up(n, m):
    return ((n + m - 1) // m) * m


PACKED_NAMES = [
    "wva", "wu0x", "wu0v", "bu0", "wu2", "bu2",        # block 1 (H -> H//2)
    "wvab", "wu0bx", "wu0bv", "bu0b", "wu2b", "bu2b",  # block 2 (H//2 -> 1)
]


def pack_params(per_task_params, matmul_dtype=jnp.bfloat16):
    """Pre-fuse + lane-pad per-task weights.

    * wv1||wv2 (both blocks) and the x-half / vec1-half split of update_net's
      first linear are fused offline so the in-kernel concatenate disappears.
    * The shared-input weights (stage-A vec projection, x @ wu0x) are further
      concatenated across tasks so the kernel issues ONE wide matmul for all
      tasks (fills the 256-wide MXU N dimension on v6e/v7x).
    * Every per-task segment is zero-padded to a 128-lane boundary so all
      in-kernel slices are aligned (free views, no XLU lane rotates); the zero
      rows/cols propagate exact zeros, so the math is unchanged.
    * Matmul weights are pre-cast to `matmul_dtype` (bf16 default); biases
      stay f32 (added post-accumulation).
    """
    H = per_task_params[0]["wv1"].shape[0]
    O1 = H // 2
    Hs = _round_up(H, _LANE)
    O1s = _round_up(O1, _LANE)

    def padc(w, width):                    # zero-pad output (lane) dim
        return jnp.pad(w, ((0, 0), (0, width - w.shape[1])))

    def padr(w, rows):                     # zero-pad input (contraction) dim
        return jnp.pad(w, ((0, rows - w.shape[0]), (0, 0)))

    def stack(fn):
        return jnp.stack([fn(p) for p in per_task_params], axis=0)

    def wc(w):
        return w.astype(matmul_dtype)

    # Stage A (vec1_proj || vec2_proj), fused over tasks: [H, T*(Hs+O1s)]
    wva = jnp.concatenate(
        [jnp.concatenate([padc(p["wv1"], Hs), padc(p["wv2"], O1s)], axis=1)
         for p in per_task_params], axis=1)
    # x-half of update_net[0], fused over tasks: [H, T*Hs]
    wu0x = jnp.concatenate(
        [padc(p["wu0"][:H], Hs) for p in per_task_params], axis=1)

    return dict(
        # ---- block 1 (H -> O1) ----
        wva=wc(wva),
        wu0x=wc(wu0x),
        wu0v=wc(stack(lambda p: padr(padc(p["wu0"][H:], Hs), Hs))),     # [T,Hs,Hs]
        bu0=stack(lambda p: padc(p["bu0"], Hs)),                        # [T,1,Hs]
        wu2=wc(stack(lambda p: padr(jnp.concatenate(
            [padc(p["wu2"][:, :O1], O1s), padc(p["wu2"][:, O1:], O1s)],
            axis=1), Hs))),                                             # [T,Hs,2*O1s]
        bu2=stack(lambda p: jnp.concatenate(
            [padc(p["bu2"][:, :O1], O1s), padc(p["bu2"][:, O1:], O1s)],
            axis=1)),                                                   # [T,1,2*O1s]
        # ---- block 2 (O1 -> 1) ----
        wvab=wc(stack(lambda p: padr(jnp.concatenate(
            [padc(p["wv1b"], O1s), p["wv2b"]], axis=1), O1s))),         # [T,O1s,O1s+1]
        wu0bx=wc(stack(lambda p: padr(padc(p["wu0b"][:O1], O1s), O1s))),
        wu0bv=wc(stack(lambda p: padr(padc(p["wu0b"][O1:], O1s), O1s))),
        bu0b=stack(lambda p: padc(p["bu0b"], O1s)),                     # [T,1,O1s]
        wu2b=wc(stack(lambda p: padr(p["wu2b"], O1s))),                 # [T,O1s,2]
        bu2b=stack(lambda p: p["bu2b"]),                                # [T,1,2]
    )


def _output_kernel(
    x_ref, v_ref, batch_ref,
    wva_ref, wu0x_ref, wu0v_ref, bu0_ref, wu2_ref, bu2_ref,
    wvab_ref, wu0bx_ref, wu0bv_ref, bu0b_ref, wu2b_ref, bu2b_ref,
    energy_ref, forces_ref,
    x2_acc,
    *, H, Hs, O1s, bsz, num_tasks, mm_dtype,
):
    f32 = jnp.float32

    def mm(a, b):
        # Weights are pre-cast in the wrapper; activations cast here (no-op
        # when already in mm_dtype). Accumulate in f32 on the MXU.
        return jnp.dot(a.astype(mm_dtype), b.astype(mm_dtype),
                       preferred_element_type=f32)

    # Streamed operands: cast ONCE per tile (hoisted out of the task loop).
    x = x_ref[...].astype(mm_dtype)                       # [Tn, H]
    v2d = v_ref[...].astype(mm_dtype)                     # [Tn, 3*H]
    tn = x.shape[0]

    # -------- shared-input matmuls, fused across ALL tasks --------
    # Stage A: vec1_proj||vec2_proj for every task, one matmul per component.
    wa = wva_ref[...]                                     # [H, T*(Hs+O1s)]
    pa = [mm(v2d[:, p * H:(p + 1) * H], wa) for p in range(3)]
    # x-half of update_net[0] for every task in one matmul.
    xb = mm(x, wu0x_ref[...])                             # [Tn, T*Hs]

    # One-hot graph membership for the scatter-sum (padded atoms carry
    # batch id == bsz, so their row is all-zero and contributes nothing).
    b = batch_ref[...]                                    # [Tn, 1] int32
    graph_ids = lax.broadcasted_iota(jnp.int32, (tn, bsz), 1)
    onehot = (b == graph_ids).astype(f32)                 # [Tn, bsz]

    # Lane-padded forces slab: zero the pad lanes once, dense writeback DMA.
    forces_ref[...] = jnp.zeros_like(forces_ref)

    wt = Hs + O1s                                         # per-task stage-A width
    for t in range(num_tasks):                            # unrolled; small math
        a0 = t * wt
        # ---- GatedEquivariantBlock 1 (H -> O1, scalar_activation=True) ----
        vb = [pa[p][:, a0:a0 + Hs] for p in range(3)]             # aligned views
        vec2 = [pa[p][:, a0 + Hs:a0 + wt] for p in range(3)]      # aligned views
        vec1 = jnp.sqrt(vb[0] ** 2 + vb[1] ** 2 + vb[2] ** 2)     # [Tn, Hs] f32

        h = _silu(xb[:, t * Hs:(t + 1) * Hs]
                  + mm(vec1, wu0v_ref[t]) + bu0_ref[t])           # [Tn, Hs]
        u = mm(h, wu2_ref[t]) + bu2_ref[t]                        # [Tn, 2*O1s]
        x1 = _silu(u[:, :O1s])                                    # aligned halves
        g = u[:, O1s:]

        # ---- GatedEquivariantBlock 2 (O1 -> 1) ----
        wvab = wvab_ref[t]                                        # [O1s, O1s+1]
        p2 = [mm(g * vec2[p], wvab) for p in range(3)]
        vbb = [p2[p][:, :O1s] for p in range(3)]
        vec2b = [p2[p][:, O1s:O1s + 1] for p in range(3)]         # [Tn, 1]
        vec1b = jnp.sqrt(vbb[0] ** 2 + vbb[1] ** 2 + vbb[2] ** 2)

        h2 = _silu(mm(x1, wu0bx_ref[t]) + mm(vec1b, wu0bv_ref[t])
                   + bu0b_ref[t])                                 # [Tn, O1s]
        u2 = mm(h2, wu2b_ref[t]) + bu2b_ref[t]                    # [Tn, 2]
        x2 = u2[:, 0:1]                                           # per-atom energy
        g2 = u2[:, 1:2]                                           # vector gate

        # Write this task's results immediately (bounds live ranges so the
        # unrolled loop does not accumulate width-1 vregs / spill).
        x2_acc[:, t:t + 1] = x2
        forces_ref[:, 3 * t:3 * t + 3] = jnp.concatenate(
            [g2 * vec2b[0], g2 * vec2b[1], g2 * vec2b[2]], axis=-1)

    # Per-tile partial graph energies: one-hot matmul contracting the atom
    # axis directly (no transpose); reduced over tiles outside the kernel.
    # TODO(synk): for bsz in the hundreds+ emit per-atom energies instead and
    # segment-sum outside the kernel (the [Tn, bsz] one-hot becomes the hot spot).
    energy_ref[...] = lax.dot_general(
        onehot, x2_acc[...], dimension_numbers=(((0,), (0,)), ((), ())),
        preferred_element_type=f32)[None]


def output_forward_pallas(
    x, v, batch, per_task_params, *, bsz,
    tile_n=512,
    matmul_dtype=jnp.bfloat16,
    vmem_limit_bytes=48 * 1024 * 1024,
    weight_pipeline_mode=None,
):
    """Equivalent of Output.forward: returns (E [bsz, T], F [N, 3, T]).

    x: [N, H] node scalars, v: [N, 3, H] node vectors, batch: [N] graph ids.
    Inputs keep their HBM dtype (feed bf16 to halve the dominant read
    traffic); matmuls run in `matmul_dtype` on the MXU with f32 accumulation.

    Tuning notes:
      * tile_n: sweep 256-1024 on v5e/v6e (128 MiB VMEM); cap around 512 on
        v7x (64 MiB physical) or when num_tasks is large (the fused stage-A
        intermediates are [tile_n, T*(Hs+O1s)] f32).
      * weight_pipeline_mode: pass pl.Buffered(1) on VMEM-tight v7x configs to
        single-buffer the grid-invariant resident weights.
    """
    N, H = x.shape
    assert v.shape == (N, 3, H), v.shape
    O1 = H // 2
    num_tasks = len(per_task_params)
    Hs = _round_up(H, _LANE)
    O1s = _round_up(O1, _LANE)

    # Tile sizing: multiple of 8, no larger than the (8-rounded) atom count,
    # and >= 2 grid steps whenever possible so both v7x TensorCores get work
    # under dimension_semantics=("parallel",).
    tile_n = max(8, min((tile_n // 8) * 8, _round_up(N, 8)))
    if _round_up(N, tile_n) // tile_n < 2 and N > 8:
        tile_n = _round_up((N + 1) // 2, 8)
    n_pad = _round_up(N, tile_n)
    n_tiles = n_pad // tile_n

    # Keep the producer dtype (no f32 upcast) and avoid any transpose of v:
    # [N, 3, H] -> [N, 3H] is a free contiguous reshape.
    x_p = jnp.pad(x, ((0, n_pad - N), (0, 0)))
    v_p = jnp.pad(v.reshape(N, 3 * H), ((0, n_pad - N), (0, 0)))
    # Padded atoms get graph id == bsz (out of range) => zero one-hot row.
    batch_p = jnp.pad(batch.astype(jnp.int32).reshape(N, 1),
                      ((0, n_pad - N), (0, 0)), constant_values=bsz)

    packed = pack_params(per_task_params, matmul_dtype)
    param_arrays = [packed[n] for n in PACKED_NAMES]

    # Lane-padded forces slab (dense stores / dense writeback DMA).
    fp = _round_up(3 * num_tasks, _LANE)

    w_kwargs = {}
    if weight_pipeline_mode is not None:
        w_kwargs["pipeline_mode"] = weight_pipeline_mode

    def full_spec(arr):
        return pl.BlockSpec(arr.shape, lambda i, _nd=arr.ndim: (0,) * _nd,
                            **w_kwargs)

    in_specs = [
        pl.BlockSpec((tile_n, H), lambda i: (i, 0)),          # x
        pl.BlockSpec((tile_n, 3 * H), lambda i: (i, 0)),      # v (lane-blocked)
        pl.BlockSpec((tile_n, 1), lambda i: (i, 0)),          # batch ids
    ] + [full_spec(a) for a in param_arrays]                  # resident weights

    out_specs = (
        pl.BlockSpec((1, bsz, num_tasks), lambda i: (i, 0, 0)),   # energy partials
        pl.BlockSpec((tile_n, fp), lambda i: (i, 0)),             # packed forces
    )

    kernel = functools.partial(
        _output_kernel, H=H, Hs=Hs, O1s=O1s, bsz=bsz,
        num_tasks=num_tasks, mm_dtype=matmul_dtype)

    energy_partials, forces_packed = pl.pallas_call(
        kernel,
        out_shape=(
            jax.ShapeDtypeStruct((n_tiles, bsz, num_tasks), jnp.float32),
            jax.ShapeDtypeStruct((n_pad, fp), jnp.float32),
        ),
        grid=(n_tiles,),
        in_specs=in_specs,
        out_specs=out_specs,
        scratch_shapes=[pltpu.VMEM((tile_n, num_tasks), jnp.float32)],
        compiler_params=pltpu.CompilerParams(
            # Each grid step writes its own output blocks, so the atom axis is
            # truly parallel (v7x megacore OK). Raise the 16/32 MiB scoped VMEM
            # defaults while leaving headroom under v7x's 64 MiB physical.
            dimension_semantics=("parallel",),
            vmem_limit_bytes=vmem_limit_bytes),
    )(x_p, v_p, batch_p, *param_arrays)

    E = jnp.sum(energy_partials, axis=0)                        # [bsz, T]
    F = forces_packed[:N, :3 * num_tasks].reshape(N, num_tasks, 3)
    return E, jnp.swapaxes(F, 1, 2)                             # [N, 3, T]


# ---------------------- pure-JAX reference ----------------------
def _gated_block_ref(x, v, wv1, wv2, wu0, bu0, wu2, bu2, scalar_activation):
    hp = jax.lax.Precision.HIGHEST
    vb = jnp.einsum("nph,hk->npk", v, wv1, precision=hp)
    vec1 = jnp.sqrt(jnp.sum(vb * vb, axis=-2))
    vec2 = jnp.einsum("nph,hk->npk", v, wv2, precision=hp)
    xc = jnp.concatenate([x, vec1], axis=-1)
    h = _silu(jnp.dot(xc, wu0, precision=hp) + bu0[0])
    u = jnp.dot(h, wu2, precision=hp) + bu2[0]
    o = wu2.shape[1] // 2
    xo, g = u[:, :o], u[:, o:]
    vout = g[:, None, :] * vec2
    if scalar_activation:
        xo = _silu(xo)
    return xo, vout


def _head_ref(x, v, batch, p, bsz):
    x1, v1 = _gated_block_ref(x, v, p["wv1"], p["wv2"], p["wu0"], p["bu0"],
                              p["wu2"], p["bu2"], True)
    x2, v2 = _gated_block_ref(x1, v1, p["wv1b"], p["wv2b"], p["wu0b"], p["bu0b"],
                              p["wu2b"], p["bu2b"], False)
    energy = jax.ops.segment_sum(x2, batch, num_segments=bsz)   # [bsz, 1]
    forces = v2[..., 0]                                         # [N, 3]
    return energy, forces


def _output_ref(x, v, batch, per_task_params, bsz):
    es, fs = [], []
    for p in per_task_params:
        e, f = _head_ref(x, v, batch, p, bsz)
        es.append(e)
        fs.append(f)
    return jnp.concatenate(es, axis=-1), jnp.stack(fs, axis=-1)


# ---------------------- parameter init ----------------------
def make_head_params(key, H):
    O1 = H // 2
    ks = jax.random.split(key, 8)

    def xavier(k, shape):
        fan_in, fan_out = shape
        limit = float(np.sqrt(6.0 / (fan_in + fan_out)))
        return jax.random.uniform(k, shape, jnp.float32, -limit, limit)

    return dict(
        wv1=xavier(ks[0], (H, H)),
        wv2=xavier(ks[1], (H, O1)),
        wu0=xavier(ks[2], (2 * H, H)),
        bu0=jnp.zeros((1, H), jnp.float32),          # reset_parameters fills 0
        wu2=xavier(ks[3], (H, 2 * O1)),
        bu2=jnp.zeros((1, 2 * O1), jnp.float32),
        wv1b=xavier(ks[4], (O1, O1)),
        wv2b=xavier(ks[5], (O1, 1)),
        wu0b=xavier(ks[6], (2 * O1, O1)),
        bu0b=jnp.zeros((1, O1), jnp.float32),
        wu2b=xavier(ks[7], (O1, 2)),
        bu2b=jnp.zeros((1, 2), jnp.float32),
    )


if __name__ == "__main__":
    H = 32          # hidden_channels
    N = 16          # n_atoms
    BSZ = 2         # number of graphs in the batch
    NUM_TASKS = 2

    key = jax.random.PRNGKey(0)
    kx, kv, kp, kb = jax.random.split(key, 4)
    x = jax.random.normal(kx, (N, H), jnp.float32)
    v = jax.random.normal(kv, (N, 3, H), jnp.float32)
    batch = jnp.array([0] * 9 + [1] * 7, jnp.int32)   # graph assignment per atom

    per_task_params = [
        make_head_params(k, H) for k in jax.random.split(kp, NUM_TASKS)
    ]

    # --- check 1: f32 MXU path, tight tolerance (numerics parity).
    #     (N=16 -> the clamp splits into 2 tiles of 8, exercising the
    #      multi-tile partial-energy reduction.)
    E, F = output_forward_pallas(x, v, batch, per_task_params, bsz=BSZ,
                                 matmul_dtype=jnp.float32)
    E, F = jax.block_until_ready(E), jax.block_until_ready(F)
    E_ref, F_ref = _output_ref(x, v, batch, per_task_params, BSZ)
    assert E.shape == (BSZ, NUM_TASKS) and F.shape == (N, 3, NUM_TASKS)
    np.testing.assert_allclose(np.asarray(E), np.asarray(E_ref), rtol=5e-3, atol=5e-3)
    np.testing.assert_allclose(np.asarray(F), np.asarray(F_ref), rtol=5e-3, atol=5e-3)

    # --- check 2: production path: bf16 inputs kept in HBM + default bf16
    #     MXU dtype, non-tile-multiple atom count (padding / masked one-hot
    #     rows), 3-tile grid.
    N2, BSZ2 = 20, 3
    k2x, k2v = jax.random.split(kb, 2)
    x2 = jax.random.normal(k2x, (N2, H), jnp.float32)
    v2 = jax.random.normal(k2v, (N2, 3, H), jnp.float32)
    batch2 = jnp.array([0] * 7 + [1] * 6 + [2] * 7, jnp.int32)

    x2_in = x2.astype(jnp.bfloat16)
    v2_in = v2.astype(jnp.bfloat16)
    E2, F2 = output_forward_pallas(x2_in, v2_in, batch2, per_task_params,
                                   bsz=BSZ2, tile_n=8)
    E2, F2 = jax.block_until_ready(E2), jax.block_until_ready(F2)
    E2_ref, F2_ref = _output_ref(x2_in.astype(jnp.float32),
                                 v2_in.astype(jnp.float32),
                                 batch2, per_task_params, BSZ2)
    np.testing.assert_allclose(np.asarray(E2), np.asarray(E2_ref), rtol=1e-1, atol=1e-1)
    np.testing.assert_allclose(np.asarray(F2), np.asarray(F2_ref), rtol=1e-1, atol=1e-1)

    print("KERNEL_OK")
</pallas_src>

<mosaic_0001>
module attributes {stable_mosaic.version = 11 : i64} {
  func.func @_output_kernel(%arg0: i32, %arg1: memref<8x32xf32, #tpu.memory_space<vmem>>, %arg2: memref<8x96xf32, #tpu.memory_space<vmem>>, %arg3: memref<8x1xi32, #tpu.memory_space<vmem>>, %arg4: memref<32x512xf32, #tpu.memory_space<vmem>>, %arg5: memref<32x256xf32, #tpu.memory_space<vmem>>, %arg6: memref<2x128x128xf32, #tpu.memory_space<vmem>>, %arg7: memref<2x1x128xf32, #tpu.memory_space<vmem>>, %arg8: memref<2x128x256xf32, #tpu.memory_space<vmem>>, %arg9: memref<2x1x256xf32, #tpu.memory_space<vmem>>, %arg10: memref<2x128x129xf32, #tpu.memory_space<vmem>>, %arg11: memref<2x128x128xf32, #tpu.memory_space<vmem>>, %arg12: memref<2x128x128xf32, #tpu.memory_space<vmem>>, %arg13: memref<2x1x128xf32, #tpu.memory_space<vmem>>, %arg14: memref<2x128x2xf32, #tpu.memory_space<vmem>>, %arg15: memref<2x1x2xf32, #tpu.memory_space<vmem>>, %arg16: memref<1x2x2xf32, #tpu.memory_space<vmem>>, %arg17: memref<8x128xf32, #tpu.memory_space<vmem>>, %arg18: memref<8x2xf32, #tpu.memory_space<vmem>>) attributes {dimension_semantics = [#tpu.dimension_semantics<parallel>], iteration_bounds = array<i64: 2>, scalar_prefetch = 0 : i64, scratch_operands = 1 : i64, tpu.core_type = #tpu.core_type<tc>, window_params = [{transform_indices = @transform_0, window_bounds = array<i64: 8, 32>}, {transform_indices = @transform_1, window_bounds = array<i64: 8, 96>}, {transform_indices = @transform_2, window_bounds = array<i64: 8, 1>}, {pipeline_mode = #tpu.pipeline_mode<synchronous>, transform_indices = @transform_3, window_bounds = array<i64: 32, 512>}, {pipeline_mode = #tpu.pipeline_mode<synchronous>, transform_indices = @transform_4, window_bounds = array<i64: 32, 256>}, {pipeline_mode = #tpu.pipeline_mode<synchronous>, transform_indices = @transform_5, window_bounds = array<i64: 2, 128, 128>}, {pipeline_mode = #tpu.pipeline_mode<synchronous>, transform_indices = @transform_6, window_bounds = array<i64: 2, 1, 128>}, {pipeline_mode = #tpu.pipeline_mode<synchronous>, transform_indices = @transform_7, window_bounds = array<i64: 2, 128, 256>}, {pipeline_mode = #tpu.pipeline_mode<synchronous>, transform_indices = @transform_8, window_bounds = array<i64: 2, 1, 256>}, {pipeline_mode = #tpu.pipeline_mode<synchronous>, transform_indices = @transform_9, window_bounds = array<i64: 2, 128, 129>}, {pipeline_mode = #tpu.pipeline_mode<synchronous>, transform_indices = @transform_10, window_bounds = array<i64: 2, 128, 128>}, {pipeline_mode = #tpu.pipeline_mode<synchronous>, transform_indices = @transform_11, window_bounds = array<i64: 2, 128, 128>}, {pipeline_mode = #tpu.pipeline_mode<synchronous>, transform_indices = @transform_12, window_bounds = array<i64: 2, 1, 128>}, {pipeline_mode = #tpu.pipeline_mode<synchronous>, transform_indices = @transform_13, window_bounds = array<i64: 2, 128, 2>}, {pipeline_mode = #tpu.pipeline_mode<synchronous>, transform_indices = @transform_14, window_bounds = array<i64: 2, 1, 2>}, {transform_indices = @transform_15, window_bounds = array<i64: 1, 2, 2>}, {transform_indices = @transform_16, window_bounds = array<i64: 8, 128>}]} {
    %c0 = arith.constant 0 : index
    %c0_0 = arith.constant 0 : index
    %0 = vector.load %arg1[%c0, %c0_0] : memref<8x32xf32, #tpu.memory_space<vmem>>, vector<8x32xf32>
    %c0_1 = arith.constant 0 : index
    %c0_2 = arith.constant 0 : index
    %1 = vector.load %arg2[%c0_1, %c0_2] : memref<8x96xf32, #tpu.memory_space<vmem>>, vector<8x96xf32>
    %c0_3 = arith.constant 0 : index
    %c0_4 = arith.constant 0 : index
    %2 = vector.load %arg4[%c0_3, %c0_4] : memref<32x512xf32, #tpu.memory_space<vmem>>, vector<32x512xf32>
    %3 = vector.extract_strided_slice %1 {offsets = [0, 0], sizes = [8, 32], strides = [1, 1]} : vector<8x96xf32> to vector<8x32xf32>
    %cst = arith.constant dense<0.000000e+00> : vector<8x512xf32>
    %4 = tpu.matmul %3, %2, %cst {dimension_numbers = #tpu.dot_dimension_numbers<[1], [0], [0], [1], [0, 0, 1, 1], [], []>} : vector<8x32xf32>, vector<32x512xf32>, vector<8x512xf32> -> vector<8x512xf32>
    %5 = vector.extract_strided_slice %1 {offsets = [0, 32], sizes = [8, 32], strides = [1, 1]} : vector<8x96xf32> to vector<8x32xf32>
    %cst_5 = arith.constant dense<0.000000e+00> : vector<8x512xf32>
    %6 = tpu.matmul %5, %2, %cst_5 {dimension_numbers = #tpu.dot_dimension_numbers<[1], [0], [0], [1], [0, 0, 1, 1], [], []>} : vector<8x32xf32>, vector<32x512xf32>, vector<8x512xf32> -> vector<8x512xf32>
    %7 = vector.extract_strided_slice %1 {offsets = [0, 64], sizes = [8, 32], strides = [1, 1]} : vector<8x96xf32> to vector<8x32xf32>
    %cst_6 = arith.constant dense<0.000000e+00> : vector<8x512xf32>
    %8 = tpu.matmul %7, %2, %cst_6 {dimension_numbers = #tpu.dot_dimension_numbers<[1], [0], [0], [1], [0, 0, 1, 1], [], []>} : vector<8x32xf32>, vector<32x512xf32>, vector<8x512xf32> -> vector<8x512xf32>
    %c0_7 = arith.constant 0 : index
    %c0_8 = arith.constant 0 : index
    %9 = vector.load %arg5[%c0_7, %c0_8] : memref<32x256xf32, #tpu.memory_space<vmem>>, vector<32x256xf32>
    %cst_9 = arith.constant dense<0.000000e+00> : vector<8x256xf32>
    %10 = tpu.matmul %0, %9, %cst_9 {dimension_numbers = #tpu.dot_dimension_numbers<[1], [0], [0], [1], [0, 0, 1, 1], [], []>} : vector<8x32xf32>, vector<32x256xf32>, vector<8x256xf32> -> vector<8x256xf32>
    %c0_10 = arith.constant 0 : index
    %c0_11 = arith.constant 0 : index
    %11 = vector.load %arg3[%c0_10, %c0_11] : memref<8x1xi32, #tpu.memory_space<vmem>>, vector<8x1xi32>
    %12 = tpu.iota {dimensions = array<i32: 1>} : vector<8x2xi32>
    %13 = vector.broadcast %11 : vector<8x1xi32> to vector<8x2xi32>
    %14 = arith.cmpi eq, %13, %12 : vector<8x2xi32>
    %15 = arith.extui %14 : vector<8x2xi1> to vector<8x2xi32>
    %16 = arith.sitofp %15 : vector<8x2xi32> to vector<8x2xf32>
    %cst_12 = arith.constant 0.000000e+00 : f32
    %17 = vector.broadcast %cst_12 : f32 to vector<8x128xf32>
    %c0_13 = arith.constant 0 : index
    %c0_14 = arith.constant 0 : index
    %18 = vector.load %arg17[%c0_13, %c0_14] : memref<8x128xf32, #tpu.memory_space<vmem>>, vector<8x128xf32>
    tpu.vector_store %arg17[%c0_13, %c0_14], %17 {strides = array<i32>} : memref<8x128xf32, #tpu.memory_space<vmem>>, vector<8x128xf32>,
    %19 = vector.extract_strided_slice %4 {offsets = [0, 0], sizes = [8, 128], strides = [1, 1]} : vector<8x512xf32> to vector<8x128xf32>
    %20 = vector.extract_strided_slice %6 {offsets = [0, 0], sizes = [8, 128], strides = [1, 1]} : vector<8x512xf32> to vector<8x128xf32>
    %21 = vector.extract_strided_slice %8 {offsets = [0, 0], sizes = [8, 128], strides = [1, 1]} : vector<8x512xf32> to vector<8x128xf32>
    %22 = vector.extract_strided_slice %4 {offsets = [0, 128], sizes = [8, 128], strides = [1, 1]} : vector<8x512xf32> to vector<8x128xf32>
    %23 = vector.extract_strided_slice %6 {offsets = [0, 128], sizes = [8, 128], strides = [1, 1]} : vector<8x512xf32> to vector<8x128xf32>
    %24 = vector.extract_strided_slice %8 {offsets = [0, 128], sizes = [8, 128], strides = [1, 1]} : vector<8x512xf32> to vector<8x128xf32>
    %25 = arith.mulf %19, %19 : vector<8x128xf32>
    %26 = arith.mulf %20, %20 : vector<8x128xf32>
    %27 = arith.addf %25, %26 : vector<8x128xf32>
    %28 = arith.mulf %21, %21 : vector<8x128xf32>
    %29 = arith.addf %27, %28 : vector<8x128xf32>
    %30 = math.sqrt %29 : vector<8x128xf32>
    %31 = vector.extract_strided_slice %10 {offsets = [0, 0], sizes = [8, 128], strides = [1, 1]} : vector<8x256xf32> to vector<8x128xf32>
    %c0_15 = arith.constant 0 : index
    %c0_16 = arith.constant 0 : index
    %c0_17 = arith.constant 0 : index
    %32 = vector.load %arg6[%c0_15, %c0_16, %c0_17] : memref<2x128x128xf32, #tpu.memory_space<vmem>>, vector<1x128x128xf32>
    %33 = vector.shape_cast %32 : vector<1x128x128xf32> to vector<128x128xf32>
    %cst_18 = arith.constant dense<0.000000e+00> : vector<8x128xf32>
    %34 = tpu.matmul %30, %33, %cst_18 {dimension_numbers = #tpu.dot_dimension_numbers<[1], [0], [0], [1], [0, 0, 1, 1], [], []>} : vector<8x128xf32>, vector<128x128xf32>, vector<8x128xf32> -> vector<8x128xf32>
    %35 = arith.addf %31, %34 : vector<8x128xf32>
    %c0_19 = arith.constant 0 : index
    %c0_20 = arith.constant 0 : index
    %c0_21 = arith.constant 0 : index
    %36 = vector.load %arg7[%c0_19, %c0_20, %c0_21] : memref<2x1x128xf32, #tpu.memory_space<vmem>>, vector<1x1x128xf32>
    %37 = vector.shape_cast %36 : vector<1x1x128xf32> to vector<1x128xf32>
    %38 = vector.broadcast %37 : vector<1x128xf32> to vector<8x128xf32>
    %39 = arith.addf %35, %38 : vector<8x128xf32>
    %40 = arith.negf %39 : vector<8x128xf32>
    %41 = math.exp %40 : vector<8x128xf32>
    %cst_22 = arith.constant 1.000000e+00 : f32
    %42 = vector.broadcast %cst_22 : f32 to vector<8x128xf32>
    %43 = arith.addf %42, %41 : vector<8x128xf32>
    %44 = arith.divf %42, %43 : vector<8x128xf32>
    %45 = arith.mulf %39, %44 : vector<8x128xf32>
    %c0_23 = arith.constant 0 : index
    %c0_24 = arith.constant 0 : index
    %c0_25 = arith.constant 0 : index
    %46 = vector.load %arg8[%c0_23, %c0_24, %c0_25] : memref<2x128x256xf32, #tpu.memory_space<vmem>>, vector<1x128x256xf32>
    %47 = vector.shape_cast %46 : vector<1x128x256xf32> to vector<128x256xf32>
    %cst_26 = arith.constant dense<0.000000e+00> : vector<8x256xf32>
    %48 = tpu.matmul %45, %47, %cst_26 {dimension_numbers = #tpu.dot_dimension_numbers<[1], [0], [0], [1], [0, 0, 1, 1], [], []>} : vector<8x128xf32>, vector<128x256xf32>, vector<8x256xf32> -> vector<8x256xf32>
    %c0_27 = arith.constant 0 : index
    %c0_28 = arith.constant 0 : index
    %c0_29 = arith.constant 0 : index
    %49 = vector.load %arg9[%c0_27, %c0_28, %c0_29] : memref<2x1x256xf32, #tpu.memory_space<vmem>>, vector<1x1x256xf32>
    %50 = vector.shape_cast %49 : vector<1x1x256xf32> to vector<1x256xf32>
    %51 = vector.broadcast %50 : vector<1x256xf32> to vector<8x256xf32>
    %52 = arith.addf %48, %51 : vector<8x256xf32>
    %53 = vector.extract_strided_slice %52 {offsets = [0, 0], sizes = [8, 128], strides = [1, 1]} : vector<8x256xf32> to vector<8x128xf32>
    %54 = arith.negf %53 : vector<8x128xf32>
    %55 = math.exp %54 : vector<8x128xf32>
    %cst_30 = arith.constant 1.000000e+00 : f32
    %56 = vector.broadcast %cst_30 : f32 to vector<8x128xf32>
    %57 = arith.addf %56, %55 : vector<8x128xf32>
    %58 = arith.divf %56, %57 : vector<8x128xf32>
    %59 = arith.mulf %53, %58 : vector<8x128xf32>
    %60 = vector.extract_strided_slice %52 {offsets = [0, 128], sizes = [8, 128], strides = [1, 1]} : vector<8x256xf32> to vector<8x128xf32>
    %c0_31 = arith.constant 0 : index
    %c0_32 = arith.constant 0 : index
    %c0_33 = arith.constant 0 : index
    %61 = vector.load %arg10[%c0_31, %c0_32, %c0_33] : memref<2x128x129xf32, #tpu.memory_space<vmem>>, vector<1x128x129xf32>
    %62 = vector.shape_cast %61 : vector<1x128x129xf32> to vector<128x129xf32>
    %63 = arith.mulf %60, %22 : vector<8x128xf32>
    %cst_34 = arith.constant dense<0.000000e+00> : vector<8x129xf32>
    %64 = tpu.matmul %63, %62, %cst_34 {dimension_numbers = #tpu.dot_dimension_numbers<[1], [0], [0], [1], [0, 0, 1, 1], [], []>} : vector<8x128xf32>, vector<128x129xf32>, vector<8x129xf32> -> vector<8x129xf32>
    %65 = arith.mulf %60, %23 : vector<8x128xf32>
    %cst_35 = arith.constant dense<0.000000e+00> : vector<8x129xf32>
    %66 = tpu.matmul %65, %62, %cst_35 {dimension_numbers = #tpu.dot_dimension_numbers<[1], [0], [0], [1], [0, 0, 1, 1], [], []>} : vector<8x128xf32>, vector<128x129xf32>, vector<8x129xf32> -> vector<8x129xf32>
    %67 = arith.mulf %60, %24 : vector<8x128xf32>
    %cst_36 = arith.constant dense<0.000000e+00> : vector<8x129xf32>
    %68 = tpu.matmul %67, %62, %cst_36 {dimension_numbers = #tpu.dot_dimension_numbers<[1], [0], [0], [1], [0, 0, 1, 1], [], []>} : vector<8x128xf32>, vector<128x129xf32>, vector<8x129xf32> -> vector<8x129xf32>
    %69 = vector.extract_strided_slice %64 {offsets = [0, 0], sizes = [8, 128], strides = [1, 1]} : vector<8x129xf32> to vector<8x128xf32>
    %70 = vector.extract_strided_slice %66 {offsets = [0, 0], sizes = [8, 128], strides = [1, 1]} : vector<8x129xf32> to vector<8x128xf32>
    %71 = vector.extract_strided_slice %68 {offsets = [0, 0], sizes = [8, 128], strides = [1, 1]} : vector<8x129xf32> to vector<8x128xf32>
    %72 = vector.extract_strided_slice %64 {offsets = [0, 128], sizes = [8, 1], strides = [1, 1]} : vector<8x129xf32> to vector<8x1xf32>
    %73 = vector.extract_strided_slice %66 {offsets = [0, 128], sizes = [8, 1], strides = [1, 1]} : vector<8x129xf32> to vector<8x1xf32>
    %74 = vector.extract_strided_slice %68 {offsets = [0, 128], sizes = [8, 1], strides = [1, 1]} : vector<8x129xf32> to vector<8x1xf32>
    %75 = arith.mulf %69, %69 : vector<8x128xf32>
    %76 = arith.mulf %70, %70 : vector<8x128xf32>
    %77 = arith.addf %75, %76 : vector<8x128xf32>
    %78 = arith.mulf %71, %71 : vector<8x128xf32>
    %79 = arith.addf %77, %78 : vector<8x128xf32>
    %80 = math.sqrt %79 : vector<8x128xf32>
    %c0_37 = arith.constant 0 : index
    %c0_38 = arith.constant 0 : index
    %c0_39 = arith.constant 0 : index
    %81 = vector.load %arg11[%c0_37, %c0_38, %c0_39] : memref<2x128x128xf32, #tpu.memory_space<vmem>>, vector<1x128x128xf32>
    %82 = vector.shape_cast %81 : vector<1x128x128xf32> to vector<128x128xf32>
    %cst_40 = arith.constant dense<0.000000e+00> : vector<8x128xf32>
    %83 = tpu.matmul %59, %82, %cst_40 {dimension_numbers = #tpu.dot_dimension_numbers<[1], [0], [0], [1], [0, 0, 1, 1], [], []>} : vector<8x128xf32>, vector<128x128xf32>, vector<8x128xf32> -> vector<8x128xf32>
    %c0_41 = arith.constant 0 : index
    %c0_42 = arith.constant 0 : index
    %c0_43 = arith.constant 0 : index
    %84 = vector.load %arg12[%c0_41, %c0_42, %c0_43] : memref<2x128x128xf32, #tpu.memory_space<vmem>>, vector<1x128x128xf32>
    %85 = vector.shape_cast %84 : vector<1x128x128xf32> to vector<128x128xf32>
    %cst_44 = arith.constant dense<0.000000e+00> : vector<8x128xf32>
    %86 = tpu.matmul %80, %85, %cst_44 {dimension_numbers = #tpu.dot_dimension_numbers<[1], [0], [0], [1], [0, 0, 1, 1], [], []>} : vector<8x128xf32>, vector<128x128xf32>, vector<8x128xf32> -> vector<8x128xf32>
    %87 = arith.addf %83, %86 : vector<8x128xf32>
    %c0_45 = arith.constant 0 : index
    %c0_46 = arith.constant 0 : index
    %c0_47 = arith.constant 0 : index
    %88 = vector.load %arg13[%c0_45, %c0_46, %c0_47] : memref<2x1x128xf32, #tpu.memory_space<vmem>>, vector<1x1x128xf32>
    %89 = vector.shape_cast %88 : vector<1x1x128xf32> to vector<1x128xf32>
    %90 = vector.broadcast %89 : vector<1x128xf32> to vector<8x128xf32>
    %91 = arith.addf %87, %90 : vector<8x128xf32>
    %92 = arith.negf %91 : vector<8x128xf32>
    %93 = math.exp %92 : vector<8x128xf32>
    %cst_48 = arith.constant 1.000000e+00 : f32
    %94 = vector.broadcast %cst_48 : f32 to vector<8x128xf32>
    %95 = arith.addf %94, %93 : vector<8x128xf32>
    %96 = arith.divf %94, %95 : vector<8x128xf32>
    %97 = arith.mulf %91, %96 : vector<8x128xf32>
    %c0_49 = arith.constant 0 : index
    %c0_50 = arith.constant 0 : index
    %c0_51 = arith.constant 0 : index
    %98 = vector.load %arg14[%c0_49, %c0_50, %c0_51] : memref<2x128x2xf32, #tpu.memory_space<vmem>>, vector<1x128x2xf32>
    %99 = vector.shape_cast %98 : vector<1x128x2xf32> to vector<128x2xf32>
    %cst_52 = arith.constant dense<0.000000e+00> : vector<8x2xf32>
    %100 = tpu.matmul %97, %99, %cst_52 {dimension_numbers = #tpu.dot_dimension_numbers<[1], [0], [0], [1], [0, 0, 1, 1], [], []>} : vector<8x128xf32>, vector<128x2xf32>, vector<8x2xf32> -> vector<8x2xf32>
    %c0_53 = arith.constant 0 : index
    %c0_54 = arith.constant 0 : index
    %c0_55 = arith.constant 0 : index
    %101 = vector.load %arg15[%c0_53, %c0_54, %c0_55] : memref<2x1x2xf32, #tpu.memory_space<vmem>>, vector<1x1x2xf32>
    %102 = vector.shape_cast %101 : vector<1x1x2xf32> to vector<1x2xf32>
    %103 = vector.broadcast %102 : vector<1x2xf32> to vector<8x2xf32>
    %104 = arith.addf %100, %103 : vector<8x2xf32>
    %105 = vector.extract_strided_slice %104 {offsets = [0, 0], sizes = [8, 1], strides = [1, 1]} : vector<8x2xf32> to vector<8x1xf32>
    %106 = vector.extract_strided_slice %104 {offsets = [0, 1], sizes = [8, 1], strides = [1, 1]} : vector<8x2xf32> to vector<8x1xf32>
    %c0_56 = arith.constant 0 : index
    %c0_57 = arith.constant 0 : index
    %107 = vector.load %arg18[%c0_56, %c0_57] : memref<8x2xf32, #tpu.memory_space<vmem>>, vector<8x1xf32>
    tpu.vector_store %arg18[%c0_56, %c0_57], %105 {strides = array<i32>} : memref<8x2xf32, #tpu.memory_space<vmem>>, vector<8x1xf32>,
    %108 = arith.mulf %106, %72 : vector<8x1xf32>
    %109 = arith.mulf %106, %73 : vector<8x1xf32>
    %110 = arith.mulf %106, %74 : vector<8x1xf32>
    %111 = tpu.concatenate %108, %109, %110 in 1 : vector<8x1xf32>, vector<8x1xf32>, vector<8x1xf32> -> vector<8x3xf32>
    %c0_58 = arith.constant 0 : index
    %c0_59 = arith.constant 0 : index
    %112 = vector.load %arg17[%c0_58, %c0_59] : memref<8x128xf32, #tpu.memory_space<vmem>>, vector<8x3xf32>
    tpu.vector_store %arg17[%c0_58, %c0_59], %111 {strides = array<i32>} : memref<8x128xf32, #tpu.memory_space<vmem>>, vector<8x3xf32>,
    %113 = vector.extract_strided_slice %4 {offsets = [0, 256], sizes = [8, 128], strides = [1, 1]} : vector<8x512xf32> to vector<8x128xf32>
    %114 = vector.extract_strided_slice %6 {offsets = [0, 256], sizes = [8, 128], strides = [1, 1]} : vector<8x512xf32> to vector<8x128xf32>
    %115 = vector.extract_strided_slice %8 {offsets = [0, 256], sizes = [8, 128], strides = [1, 1]} : vector<8x512xf32> to vector<8x128xf32>
    %116 = vector.extract_strided_slice %4 {offsets = [0, 384], sizes = [8, 128], strides = [1, 1]} : vector<8x512xf32> to vector<8x128xf32>
    %117 = vector.extract_strided_slice %6 {offsets = [0, 384], sizes = [8, 128], strides = [1, 1]} : vector<8x512xf32> to vector<8x128xf32>
    %118 = vector.extract_strided_slice %8 {offsets = [0, 384], sizes = [8, 128], strides = [1, 1]} : vector<8x512xf32> to vector<8x128xf32>
    %119 = arith.mulf %113, %113 : vector<8x128xf32>
    %120 = arith.mulf %114, %114 : vector<8x128xf32>
    %121 = arith.addf %119, %120 : vector<8x128xf32>
    %122 = arith.mulf %115, %115 : vector<8x128xf32>
    %123 = arith.addf %121, %122 : vector<8x128xf32>
    %124 = math.sqrt %123 : vector<8x128xf32>
    %125 = vector.extract_strided_slice %10 {offsets = [0, 128], sizes = [8, 128], strides = [1, 1]} : vector<8x256xf32> to vector<8x128xf32>
    %c1 = arith.constant 1 : index
    %c0_60 = arith.constant 0 : index
    %c0_61 = arith.constant 0 : index
    %126 = vector.load %arg6[%c1, %c0_60, %c0_61] : memref<2x128x128xf32, #tpu.memory_space<vmem>>, vector<1x128x128xf32>
    %127 = vector.shape_cast %126 : vector<1x128x128xf32> to vector<128x128xf32>
    %cst_62 = arith.constant dense<0.000000e+00> : vector<8x128xf32>
    %128 = tpu.matmul %124, %127, %cst_62 {dimension_numbers = #tpu.dot_dimension_numbers<[1], [0], [0], [1], [0, 0, 1, 1], [], []>} : vector<8x128xf32>, vector<128x128xf32>, vector<8x128xf32> -> vector<8x128xf32>
    %129 = arith.addf %125, %128 : vector<8x128xf32>
    %c1_63 = arith.constant 1 : index
    %c0_64 = arith.constant 0 : index
    %c0_65 = arith.constant 0 : index
    %130 = vector.load %arg7[%c1_63, %c0_64, %c0_65] : memref<2x1x128xf32, #tpu.memory_space<vmem>>, vector<1x1x128xf32>
    %131 = vector.shape_cast %130 : vector<1x1x128xf32> to vector<1x128xf32>
    %132 = vector.broadcast %131 : vector<1x128xf32> to vector<8x128xf32>
    %133 = arith.addf %129, %132 : vector<8x128xf32>
    %134 = arith.negf %133 : vector<8x128xf32>
    %135 = math.exp %134 : vector<8x128xf32>
    %cst_66 = arith.constant 1.000000e+00 : f32
    %136 = vector.broadcast %cst_66 : f32 to vector<8x128xf32>
    %137 = arith.addf %136, %135 : vector<8x128xf32>
    %138 = arith.divf %136, %137 : vector<8x128xf32>
    %139 = arith.mulf %133, %138 : vector<8x128xf32>
    %c1_67 = arith.constant 1 : index
    %c0_68 = arith.constant 0 : index
    %c0_69 = arith.constant 0 : index
    %140 = vector.load %arg8[%c1_67, %c0_68, %c0_69] : memref<2x128x256xf32, #tpu.memory_space<vmem>>, vector<1x128x256xf32>
    %141 = vector.shape_cast %140 : vector<1x128x256xf32> to vector<128x256xf32>
    %cst_70 = arith.constant dense<0.000000e+00> : vector<8x256xf32>
    %142 = tpu.matmul %139, %141, %cst_70 {dimension_numbers = #tpu.dot_dimension_numbers<[1], [0], [0], [1], [0, 0, 1, 1], [], []>} : vector<8x128xf32>, vector<128x256xf32>, vector<8x256xf32> -> vector<8x256xf32>
    %c1_71 = arith.constant 1 : index
    %c0_72 = arith.constant 0 : index
    %c0_73 = arith.constant 0 : index
    %143 = vector.load %arg9[%c1_71, %c0_72, %c0_73] : memref<2x1x256xf32, #tpu.memory_space<vmem>>, vector<1x1x256xf32>
    %144 = vector.shape_cast %143 : vector<1x1x256xf32> to vector<1x256xf32>
    %145 = vector.broadcast %144 : vector<1x256xf32> to vector<8x256xf32>
    %146 = arith.addf %142, %145 : vector<8x256xf32>
    %147 = vector.extract_strided_slice %146 {offsets = [0, 0], sizes = [8, 128], strides = [1, 1]} : vector<8x256xf32> to vector<8x128xf32>
    %148 = arith.negf %147 : vector<8x128xf32>
    %149 = math.exp %148 : vector<8x128xf32>
    %cst_74 = arith.constant 1.000000e+00 : f32
    %150 = vector.broadcast %cst_74 : f32 to vector<8x128xf32>
    %151 = arith.addf %150, %149 : vector<8x128xf32>
    %152 = arith.divf %150, %151 : vector<8x128xf32>
    %153 = arith.mulf %147, %152 : vector<8x128xf32>
    %154 = vector.extract_strided_slice %146 {offsets = [0, 128], sizes = [8, 128], strides = [1, 1]} : vector<8x256xf32> to vector<8x128xf32>
    %c1_75 = arith.constant 1 : index
    %c0_76 = arith.constant 0 : index
    %c0_77 = arith.constant 0 : index
    %155 = vector.load %arg10[%c1_75, %c0_76, %c0_77] : memref<2x128x129xf32, #tpu.memory_space<vmem>>, vector<1x128x129xf32>
    %156 = vector.shape_cast %155 : vector<1x128x129xf32> to vector<128x129xf32>
    %157 = arith.mulf %154, %116 : vector<8x128xf32>
    %cst_78 = arith.constant dense<0.000000e+00> : vector<8x129xf32>
    %158 = tpu.matmul %157, %156, %cst_78 {dimension_numbers = #tpu.dot_dimension_numbers<[1], [0], [0], [1], [0, 0, 1, 1], [], []>} : vector<8x128xf32>, vector<128x129xf32>, vector<8x129xf32> -> vector<8x129xf32>
    %159 = arith.mulf %154, %117 : vector<8x128xf32>
    %cst_79 = arith.constant dense<0.000000e+00> : vector<8x129xf32>
    %160 = tpu.matmul %159, %156, %cst_79 {dimension_numbers = #tpu.dot_dimension_numbers<[1], [0], [0], [1], [0, 0, 1, 1], [], []>} : vector<8x128xf32>, vector<128x129xf32>, vector<8x129xf32> -> vector<8x129xf32>
    %161 = arith.mulf %154, %118 : vector<8x128xf32>
    %cst_80 = arith.constant dense<0.000000e+00> : vector<8x129xf32>
    %162 = tpu.matmul %161, %156, %cst_80 {dimension_numbers = #tpu.dot_dimension_numbers<[1], [0], [0], [1], [0, 0, 1, 1], [], []>} : vector<8x128xf32>, vector<128x129xf32>, vector<8x129xf32> -> vector<8x129xf32>
    %163 = vector.extract_strided_slice %158 {offsets = [0, 0], sizes = [8, 128], strides = [1, 1]} : vector<8x129xf32> to vector<8x128xf32>
    %164 = vector.extract_strided_slice %160 {offsets = [0, 0], sizes = [8, 128], strides = [1, 1]} : vector<8x129xf32> to vector<8x128xf32>
    %165 = vector.extract_strided_slice %162 {offsets = [0, 0], sizes = [8, 128], strides = [1, 1]} : vector<8x129xf32> to vector<8x128xf32>
    %166 = vector.extract_strided_slice %158 {offsets = [0, 128], sizes = [8, 1], strides = [1, 1]} : vector<8x129xf32> to vector<8x1xf32>
    %167 = vector.extract_strided_slice %160 {offsets = [0, 128], sizes = [8, 1], strides = [1, 1]} : vector<8x129xf32> to vector<8x1xf32>
    %168 = vector.extract_strided_slice %162 {offsets = [0, 128], sizes = [8, 1], strides = [1, 1]} : vector<8x129xf32> to vector<8x1xf32>
    %169 = arith.mulf %163, %163 : vector<8x128xf32>
    %170 = arith.mulf %164, %164 : vector<8x128xf32>
    %171 = arith.addf %169, %170 : vector<8x128xf32>
    %172 = arith.mulf %165, %165 : vector<8x128xf32>
    %173 = arith.addf %171, %172 : vector<8x128xf32>
    %174 = math.sqrt %173 : vector<8x128xf32>
    %c1_81 = arith.constant 1 : index
    %c0_82 = arith.constant 0 : index
    %c0_83 = arith.constant 0 : index
    %175 = vector.load %arg11[%c1_81, %c0_82, %c0_83] : memref<2x128x128xf32, #tpu.memory_space<vmem>>, vector<1x128x128xf32>
    %176 = vector.shape_cast %175 : vector<1x128x128xf32> to vector<128x128xf32>
    %cst_84 = arith.constant dense<0.000000e+00> : vector<8x128xf32>
    %177 = tpu.matmul %153, %176, %cst_84 {dimension_numbers = #tpu.dot_dimension_numbers<[1], [0], [0], [1], [0, 0, 1, 1], [], []>} : vector<8x128xf32>, vector<128x128xf32>, vector<8x128xf32> -> vector<8x128xf32>
    %c1_85 = arith.constant 1 : index
    %c0_86 = arith.constant 0 : index
    %c0_87 = arith.constant 0 : index
    %178 = vector.load %arg12[%c1_85, %c0_86, %c0_87] : memref<2x128x128xf32, #tpu.memory_space<vmem>>, vector<1x128x128xf32>
    %179 = vector.shape_cast %178 : vector<1x128x128xf32> to vector<128x128xf32>
    %cst_88 = arith.constant dense<0.000000e+00> : vector<8x128xf32>
    %180 = tpu.matmul %174, %179, %cst_88 {dimension_numbers = #tpu.dot_dimension_numbers<[1], [0], [0], [1], [0, 0, 1, 1], [], []>} : vector<8x128xf32>, vector<128x128xf32>, vector<8x128xf32> -> vector<8x128xf32>
    %181 = arith.addf %177, %180 : vector<8x128xf32>
    %c1_89 = arith.constant 1 : index
    %c0_90 = arith.constant 0 : index
    %c0_91 = arith.constant 0 : index
    %182 = vector.load %arg13[%c1_89, %c0_90, %c0_91] : memref<2x1x128xf32, #tpu.memory_space<vmem>>, vector<1x1x128xf32>
    %183 = vector.shape_cast %182 : vector<1x1x128xf32> to vector<1x128xf32>
    %184 = vector.broadcast %183 : vector<1x128xf32> to vector<8x128xf32>
    %185 = arith.addf %181, %184 : vector<8x128xf32>
    %186 = arith.negf %185 : vector<8x128xf32>
    %187 = math.exp %186 : vector<8x128xf32>
    %cst_92 = arith.constant 1.000000e+00 : f32
    %188 = vector.broadcast %cst_92 : f32 to vector<8x128xf32>
    %189 = arith.addf %188, %187 : vector<8x128xf32>
    %190 = arith.divf %188, %189 : vector<8x128xf32>
    %191 = arith.mulf %185, %190 : vector<8x128xf32>
    %c1_93 = arith.constant 1 : index
    %c0_94 = arith.constant 0 : index
    %c0_95 = arith.constant 0 : index
    %192 = vector.load %arg14[%c1_93, %c0_94, %c0_95] : memref<2x128x2xf32, #tpu.memory_space<vmem>>, vector<1x128x2xf32>
    %193 = vector.shape_cast %192 : vector<1x128x2xf32> to vector<128x2xf32>
    %cst_96 = arith.constant dense<0.000000e+00> : vector<8x2xf32>
    %194 = tpu.matmul %191, %193, %cst_96 {dimension_numbers = #tpu.dot_dimension_numbers<[1], [0], [0], [1], [0, 0, 1, 1], [], []>} : vector<8x128xf32>, vector<128x2xf32>, vector<8x2xf32> -> vector<8x2xf32>
    %c1_97 = arith.constant 1 : index
    %c0_98 = arith.constant 0 : index
    %c0_99 = arith.constant 0 : index
    %195 = vector.load %arg15[%c1_97, %c0_98, %c0_99] : memref<2x1x2xf32, #tpu.memory_space<vmem>>, vector<1x1x2xf32>
    %196 = vector.shape_cast %195 : vector<1x1x2xf32> to vector<1x2xf32>
    %197 = vector.broadcast %196 : vector<1x2xf32> to vector<8x2xf32>
    %198 = arith.addf %194, %197 : vector<8x2xf32>
    %199 = vector.extract_strided_slice %198 {offsets = [0, 0], sizes = [8, 1], strides = [1, 1]} : vector<8x2xf32> to vector<8x1xf32>
    %200 = vector.extract_strided_slice %198 {offsets = [0, 1], sizes = [8, 1], strides = [1, 1]} : vector<8x2xf32> to vector<8x1xf32>
    %c0_100 = arith.constant 0 : index
    %c1_101 = arith.constant 1 : index
    %201 = vector.load %arg18[%c0_100, %c1_101] : memref<8x2xf32, #tpu.memory_space<vmem>>, vector<8x1xf32>
    tpu.vector_store %arg18[%c0_100, %c1_101], %199 {strides = array<i32>} : memref<8x2xf32, #tpu.memory_space<vmem>>, vector<8x1xf32>,
    %202 = arith.mulf %200, %166 : vector<8x1xf32>
    %203 = arith.mulf %200, %167 : vector<8x1xf32>
    %204 = arith.mulf %200, %168 : vector<8x1xf32>
    %205 = tpu.concatenate %202, %203, %204 in 1 : vector<8x1xf32>, vector<8x1xf32>, vector<8x1xf32> -> vector<8x3xf32>
    %c0_102 = arith.constant 0 : index
    %c3 = arith.constant 3 : index
    %206 = vector.load %arg17[%c0_102, %c3] : memref<8x128xf32, #tpu.memory_space<vmem>>, vector<8x3xf32>
    tpu.vector_store %arg17[%c0_102, %c3], %205 {strides = array<i32>} : memref<8x128xf32, #tpu.memory_space<vmem>>, vector<8x3xf32>,
    %c0_103 = arith.constant 0 : index
    %c0_104 = arith.constant 0 : index
    %207 = vector.load %arg18[%c0_103, %c0_104] : memref<8x2xf32, #tpu.memory_space<vmem>>, vector<8x2xf32>
    %cst_105 = arith.constant dense<0.000000e+00> : vector<2x2xf32>
    %208 = tpu.matmul %16, %207, %cst_105 {dimension_numbers = #tpu.dot_dimension_numbers<[0], [0], [1], [1], [0, 1, 1, 1], [], []>} : vector<8x2xf32>, vector<8x2xf32>, vector<2x2xf32> -> vector<2x2xf32>
    %209 = vector.shape_cast %208 : vector<2x2xf32> to vector<1x2x2xf32>
    %c0_106 = arith.constant 0 : index
    %c0_107 = arith.constant 0 : index
    %c0_108 = arith.constant 0 : index
    %210 = vector.load %arg16[%c0_106, %c0_107, %c0_108] : memref<1x2x2xf32, #tpu.memory_space<vmem>>, vector<1x2x2xf32>
    tpu.vector_store %arg16[%c0_106, %c0_107, %c0_108], %209 {strides = array<i32>} : memref<1x2x2xf32, #tpu.memory_space<vmem>>, vector<1x2x2xf32>,
    return
  }
  func.func @transform_0(%arg0: i32) -> (i32, i32) {
    %c0_i32 = arith.constant 0 : i32
    %c0_i32_0 = arith.constant 0 : i32
    return %arg0, %c0_i32 : i32, i32
  }
  func.func @transform_1(%arg0: i32) -> (i32, i32) {
    %c0_i32 = arith.constant 0 : i32
    %c0_i32_0 = arith.constant 0 : i32
    return %arg0, %c0_i32 : i32, i32
  }
  func.func @transform_2(%arg0: i32) -> (i32, i32) {
    %c0_i32 = arith.constant 0 : i32
    %c0_i32_0 = arith.constant 0 : i32
    return %arg0, %c0_i32 : i32, i32
  }
  func.func @transform_3(%arg0: i32) -> (i32, i32) {
    %c0_i32 = arith.constant 0 : i32
    %c0_i32_0 = arith.constant 0 : i32
    %c0_i32_1 = arith.constant 0 : i32
    return %c0_i32, %c0_i32_0 : i32, i32
  }
  func.func @transform_4(%arg0: i32) -> (i32, i32) {
    %c0_i32 = arith.constant 0 : i32
    %c0_i32_0 = arith.constant 0 : i32
    %c0_i32_1 = arith.constant 0 : i32
    return %c0_i32, %c0_i32_0 : i32, i32
  }
  func.func @transform_5(%arg0: i32) -> (i32, i32, i32) {
    %c0_i32 = arith.constant 0 : i32
    %c0_i32_0 = arith.constant 0 : i32
    %c0_i32_1 = arith.constant 0 : i32
    %c0_i32_2 = arith.constant 0 : i32
    return %c0_i32, %c0_i32_0, %c0_i32_1 : i32, i32, i32
  }
  func.func @transform_6(%arg0: i32) -> (i32, i32, i32) {
    %c0_i32 = arith.constant 0 : i32
    %c0_i32_0 = arith.constant 0 : i32
    %c0_i32_1 = arith.constant 0 : i32
    %c0_i32_2 = arith.constant 0 : i32
    return %c0_i32, %c0_i32_0, %c0_i32_1 : i32, i32, i32
  }
  func.func @transform_7(%arg0: i32) -> (i32, i32, i32) {
    %c0_i32 = arith.constant 0 : i32
    %c0_i32_0 = arith.constant 0 : i32
    %c0_i32_1 = arith.constant 0 : i32
    %c0_i32_2 = arith.constant 0 : i32
    return %c0_i32, %c0_i32_0, %c0_i32_1 : i32, i32, i32
  }
  func.func @transform_8(%arg0: i32) -> (i32, i32, i32) {
    %c0_i32 = arith.constant 0 : i32
    %c0_i32_0 = arith.constant 0 : i32
    %c0_i32_1 = arith.constant 0 : i32
    %c0_i32_2 = arith.constant 0 : i32
    return %c0_i32, %c0_i32_0, %c0_i32_1 : i32, i32, i32
  }
  func.func @transform_9(%arg0: i32) -> (i32, i32, i32) {
    %c0_i32 = arith.constant 0 : i32
    %c0_i32_0 = arith.constant 0 : i32
    %c0_i32_1 = arith.constant 0 : i32
    %c0_i32_2 = arith.constant 0 : i32
    return %c0_i32, %c0_i32_0, %c0_i32_1 : i32, i32, i32
  }
  func.func @transform_10(%arg0: i32) -> (i32, i32, i32) {
    %c0_i32 = arith.constant 0 : i32
    %c0_i32_0 = arith.constant 0 : i32
    %c0_i32_1 = arith.constant 0 : i32
    %c0_i32_2 = arith.constant 0 : i32
    return %c0_i32, %c0_i32_0, %c0_i32_1 : i32, i32, i32
  }
  func.func @transform_11(%arg0: i32) -> (i32, i32, i32) {
    %c0_i32 = arith.constant 0 : i32
    %c0_i32_0 = arith.constant 0 : i32
    %c0_i32_1 = arith.constant 0 : i32
    %c0_i32_2 = arith.constant 0 : i32
    return %c0_i32, %c0_i32_0, %c0_i32_1 : i32, i32, i32
  }
  func.func @transform_12(%arg0: i32) -> (i32, i32, i32) {
    %c0_i32 = arith.constant 0 : i32
    %c0_i32_0 = arith.constant 0 : i32
    %c0_i32_1 = arith.constant 0 : i32
    %c0_i32_2 = arith.constant 0 : i32
    return %c0_i32, %c0_i32_0, %c0_i32_1 : i32, i32, i32
  }
  func.func @transform_13(%arg0: i32) -> (i32, i32, i32) {
    %c0_i32 = arith.constant 0 : i32
    %c0_i32_0 = arith.constant 0 : i32
    %c0_i32_1 = arith.constant 0 : i32
    %c0_i32_2 = arith.constant 0 : i32
    return %c0_i32, %c0_i32_0, %c0_i32_1 : i32, i32, i32
  }
  func.func @transform_14(%arg0: i32) -> (i32, i32, i32) {
    %c0_i32 = arith.constant 0 : i32
    %c0_i32_0 = arith.constant 0 : i32
    %c0_i32_1 = arith.constant 0 : i32
    %c0_i32_2 = arith.constant 0 : i32
    return %c0_i32, %c0_i32_0, %c0_i32_1 : i32, i32, i32
  }
  func.func @transform_15(%arg0: i32) -> (i32, i32, i32) {
    %c0_i32 = arith.constant 0 : i32
    %c0_i32_0 = arith.constant 0 : i32
    %c0_i32_1 = arith.constant 0 : i32
    return %arg0, %c0_i32, %c0_i32_0 : i32, i32, i32
  }
  func.func @transform_16(%arg0: i32) -> (i32, i32) {
    %c0_i32 = arith.constant 0 : i32
    %c0_i32_0 = arith.constant 0 : i32
    return %arg0, %c0_i32 : i32, i32
  }
}

</mosaic_0001>

<bundles_post_ra>
// kernel: tpu_custom_call.1
= control target key start
LH: loop header
LB: loop body
LE: loop exit
PB: predicated region body
PF: predicated region fallthrough
CT: control target
= control target key end

     0   :  { %s5798_s0 = inlined_call_operand.vmem [shape: f32[16,32], index: 0, kind: input, shape index: {}]   ;;  %s5799_s1 = inlined_call_operand.vmem [shape: f32[16,96], index: 1, kind: input, shape index: {}]   ;;  %s5800_s2 = inlined_call_operand.vmem [shape: s32[16,1], index: 2, kind: input, shape index: {}]   ;;  %s5801_s3 = inlined_call_operand.hbm [shape: f32[32,512], index: 3, kind: input, shape index: {}]   ;;  %s5802_s4 = inlined_call_operand.hbm [shape: f32[32,256], index: 4, kind: input, shape index: {}]   ;;  %s5803_s5 = inlined_call_operand.vmem [shape: f32[2,128,128], index: 5, kind: input, shape index: {}]   ;;  %s5804_s6 = inlined_call_operand.vmem [shape: f32[2,1,128], index: 6, kind: input, shape index: {}]   ;;  %s5805_s7 = inlined_call_operand.vmem [shape: f32[2,128,256], index: 7, kind: input, shape index: {}]   ;;  %s5806_s8 = inlined_call_operand.vmem [shape: f32[2,1,256], index: 8, kind: input, shape index: {}]   ;;  %s5807_s9 = inlined_call_operand.vmem [shape: f32[2,128,129], index: 9, kind: input, shape index: {}]   ;;  %s5808_s10 = inlined_call_operand.hbm [shape: f32[2,128,128], index: 10, kind: input, shape index: {}]   ;;  %s5809_s11 = inlined_call_operand.hbm [shape: f32[2,128,128], index: 11, kind: input, shape index: {}]   ;;  %s5810_s12 = inlined_call_operand.vmem [shape: f32[2,1,128], index: 12, kind: input, shape index: {}]   ;;  %s5811_s13 = inlined_call_operand.vmem [shape: f32[2,128,2], index: 13, kind: input, shape index: {}]   ;;  %s5812_s14 = inlined_call_operand.vmem [shape: f32[2,1,2], index: 14, kind: input, shape index: {}]   ;;  %s5813_s15 = inlined_call_operand.hbm [shape: f32[2,2,2], index: 15, kind: output, shape index: {0}]   ;;  %s5814_s16 = inlined_call_operand.hbm [shape: f32[16,128], index: 16, kind: output, shape index: {1}]  }
   0x1   :  { %5829 = sst [smem:[#allocation27_spill]] %s5798_s0 }
   0x2   :  { %5830 = sst [smem:[#allocation28_spill]] %s5802_s4 }
   0x3   :  { %5831 = sst [smem:[#allocation29_spill]] %s5813_s15 }
   0x4   :  { %5832 = sst [smem:[#allocation30_spill]] %s5814_s16 }
   0x5   :  { %22 = vsyncpa [#allocation4], 0 }
   0x6   :  { %23 = vsyncpa [#allocation7], 0 }
   0x7   :  { %24 = vsyncpa [#allocation10], 0 }
   0x8   :  { %25 = vsyncpa [#allocation5], 0 }
   0x9   :  { %27 = vsyncpa [#allocation5 + $0x1], 0 }
   0xa   :  { %28 = vsyncpa [#allocation13], 0 }
   0xb   :  { %30 = vsyncpa [#allocation13 + $0x1], 0  ;;  %s4626_s21 = smov 0   ;;  %s4628_s22 = smov 0  }
   0xc   :  { %s4630_s23 = smov 0   ;;  %s4632_s24 = smov 0  }
   0xd LB: > { %5833 = sst [smem:[#allocation19_spill]] %s4506_s21  ;;  %s4647_s25 = sadd.s32 4294967295, %s4518_s24   ;;  %s4518_s24 = sphi %s4632_s24, %s5866_s24   ;;  %s4514_s23 = sphi %s4630_s23, %s5869_s23   ;;  %s4510_s22 = sphi %s4628_s22, %s5868_s22   ;;  %s4506_s21 = sphi %s4626_s21, %s5867_s21  }
   0xe   : > { %5834 = sst [smem:[#allocation20_spill]] %s4510_s22  ;;  %s3095_s26 = sadd.s32 4294967294, %s4518_s24  }
   0xf   : > { %5835 = sst [smem:[#allocation21_spill]] %s4514_s23  ;;  %s4651_s27 = sadd.s32 1, %s4518_s24  }
  0x10   : > { %5836 = sst [smem:[#allocation22_spill]] %s4518_s24  ;;  %s373_s28 = sadd.s32 1, %s4514_s23 }
  0x11   : > { %5837 = sst [smem:[#allocation23_spill]] %s4651_s27  ;;  %s370_s29 = ssub.s32 %s4518_s24, %s4651_s27 }
  0x12   : > { %p383_p0 = scmp.ne.s32.totalorder %s4514_s23, %s4510_s22  ;;  %p371_p1 = scmp.eq.s32.totalorder %s370_s29, 0 }
  0x13   : > { %p384_p2 = scmp.eq.s32.totalorder %s4647_s25, 1  ;;  %p389_p3 = scmp.ne.s32.totalorder %s4510_s22, %s4506_s21 }
  0x14   : > { %p390_p4 = scmp.eq.s32.totalorder %s3095_s26, 1  ;;  %p3096_p7 = scmp.ge.s32.totalorder %s4518_s24, 1 }
  0x15   : > { %s4662_s30 = scalar_select %p371_p1, %s4514_s23, %s373_s28  }
  0x16   : > { %p4664_p5 = por %p384_p2, %p383_p0  ;;  %p4668_p6 = por %p390_p4, %p389_p3 }
  0x17   : > { %5838 = sst [smem:[#allocation24_spill]] %s4662_s30  ;;  %p423_p8 = scmp.lt.s32.totalorder %s4518_s24, 3 }
  0x18   : > { %s5839_s0 = scalar_select %p4664_p5, 1, 0 }
  0x19   : > { %s5841_s17 = scalar_select %p4668_p6, 1, 0 }
  0x1a   : > { %5840 = sst [smem:[#allocation25_spill]] %s5839_s0  ;;  %p5821_p9 = scmp.eq.s32.totalorder %s4647_s25, 0 }
  0x1b   : > { %5842 = sst [smem:[#allocation26_spill]] %s5841_s17  ;;  %p4675_p10 = pnand %p3096_p7, %p423_p8 }
  0x1c   : > { %s4520_s19 = smov [#allocation6]   ;;  %s4521_s28 = smov [#allocation3]  }
  0x1d   : > { %s5843_s18 = scalar_select %p4675_p10, 1, 0 }
  0x1e   : > { %s448_s20 = sshll.u32 %s4520_s19, 4  ;;  %p4186_p11 = pneg %p4675_p10  ;;  %s449_s20 = int_to_ptr.vmem [resolvable:$true] %s448_s20 }
  0x1f   : > { %s435_s29 = sshll.u32 %s4521_s28, 4  ;;  %s5845_s4 = sld [smem:[#allocation28_spill]]  ;;  %s4687_s29 = int_to_ptr.vmem [resolvable:$true] %s435_s29 }
  0x20   : > { %p4683_p12 = pnand %p5821_p9, %p4186_p11 }
  0x22   : > { %p4697_p0 = pneg %p4683_p12 }
  0x25   : > { %s4300_s27 = scalar_lea.hbm %s5845_s4, 1024 }
  0x26   : > { %p4301_p13 = scmp.ne.s32.totalorder %s5845_s4, %s4300_s27  ;;  %p4307_p3 = scmp.lt.u32.totalorder %s4300_s27, %s5845_s4 }
  0x28   : > { %p4303_p1 = pnand %p4697_p0, %p4301_p13 }
  0x2a   : > { %p4304_p2 = pneg %p4303_p1 }
  0x2c   : > { %p4309_p4 = pnand %p4307_p3, %p4304_p2 }
  0x2e   : > { %4312 = shalt.err (!%p4309_p4)
}
  0x2f   : > { %s4313_s23 = scalar_lea.vmem %s449_s20, 1024  ;;  %p4321_p9 = scmp.lt.s32.totalorder %s449_s20, %s449_s20 }
  0x30   : > { %p4314_p7 = scmp.ne.s32.totalorder %s449_s20, %s4313_s23  ;;  %p4322_p6 = scmp.lt.s32.totalorder %s4313_s23, %s4313_s23 }
  0x32   : > { %p4316_p8 = pnand %p4314_p7, %p4697_p0  ;;  %p4323_p5 = por %p4322_p6, %p4321_p9 }
  0x34   : > { %p4317_p11 = pneg %p4316_p8 }
  0x36   : > { %p4324_p10 = pnand %p4323_p5, %p4317_p11 }
  0x38   : > { %4327 = shalt.err (!%p4324_p10)
}
  0x39   : > { %s4522_s21 = smov 256   ;;  %s4523_s30 = smov 16  }
  0x3a   : > { %4192 = dma.hbm_to_vmem [thread:$0]  (!%p4683_p12), %s5845_s4, 1024, %s449_s20, [#allocation7], %s4522_s21, %s4522_s21, %s4523_s30  }
  0x3b   : > { %s4328_s16 = scalar_lea.hbm %s5801_s3, 2048 }
  0x3c   : > { %p4329_p13 = scmp.ne.s32.totalorder %s5801_s3, %s4328_s16  ;;  %p4335_p9 = scmp.lt.u32.totalorder %s4328_s16, %s5801_s3 }
  0x3e   : > { %p4331_p5 = pnand %p4329_p13, %p4697_p0 }
  0x40   : > { %p4332_p6 = pneg %p4331_p5 }
  0x42   : > { %p4337_p10 = pnand %p4335_p9, %p4332_p6 }
  0x44   : > { %4340 = shalt.err (!%p4337_p10)
}
  0x45   : > { %s4341_s20 = scalar_lea.vmem %s4687_s29, 2048  ;;  %p4349_p4 = scmp.lt.s32.totalorder %s4687_s29, %s4687_s29 }
  0x46   : > { %p4342_p1 = scmp.ne.s32.totalorder %s4687_s29, %s4341_s20  ;;  %p4350_p7 = scmp.lt.s32.totalorder %s4341_s20, %s4341_s20 }
  0x48   : > { %p4344_p2 = pnand %p4342_p1, %p4697_p0  ;;  %p4351_p8 = por %p4350_p7, %p4349_p4 }
  0x4a   : > { %p4345_p3 = pneg %p4344_p2 }
  0x4c   : > { %p4352_p11 = pnand %p4351_p8, %p4345_p3 }
  0x4e   : > { %4355 = shalt.err (!%p4352_p11)
}
  0x4f   : > { %s4524_s15 = smov 512   ;;  %s4525_s16 = smov 32  }
  0x50   : > { %4189 = dma.hbm_to_vmem [thread:$0]  (!%p4683_p12), %s5801_s3, 2048, %s4687_s29, [#allocation4], %s4524_s15, %s4524_s15, %s4525_s16  }
  0x51   : > { %s4526_s21 = smov [#allocation8]   ;;  %s4356_s17 = scalar_lea.hbm %s5808_s10, 4096 }
  0x52   : > { %s476_s30 = sshll.u32 %s4526_s21, 4  ;;  %p4357_p13 = scmp.ne.s32.totalorder %s5808_s10, %s4356_s17  ;;  %s477_s30 = int_to_ptr.vmem [resolvable:$true] %s476_s30 }
  0x53   : > { %p4363_p9 = scmp.lt.u32.totalorder %s4356_s17, %s5808_s10 }
  0x54   : > { %p4359_p5 = pnand %p4357_p13, %p4697_p0 }
  0x56   : > { %p4360_p6 = pneg %p4359_p5 }
  0x58   : > { %p4365_p10 = pnand %p4363_p9, %p4360_p6 }
  0x5a   : > { %4368 = shalt.err (!%p4365_p10)
}
  0x5b   : > { %s4369_s29 = scalar_lea.vmem %s477_s30, 4096  ;;  %p4377_p4 = scmp.lt.s32.totalorder %s477_s30, %s477_s30 }
  0x5c   : > { %p4370_p1 = scmp.ne.s32.totalorder %s477_s30, %s4369_s29  ;;  %p4378_p7 = scmp.lt.s32.totalorder %s4369_s29, %s4369_s29 }
  0x5e   : > { %p4372_p2 = pnand %p4370_p1, %p4697_p0  ;;  %p4379_p8 = por %p4378_p7, %p4377_p4 }
  0x60   : > { %p4373_p3 = pneg %p4372_p2 }
  0x62   : > { %p4380_p11 = pnand %p4379_p8, %p4373_p3 }
  0x64   : > { %4383 = shalt.err (!%p4380_p11)
}
  0x65   : > { %s4527_s15 = smov 128   ;;  %s4528_s16 = smov 8  }
  0x66   : > { %4195 = dma.hbm_to_vmem [thread:$0]  (!%p4683_p12), %s5808_s10, 4096, %s477_s30, [#allocation7], %s4527_s15, %s4527_s15, %s4528_s16  }
  0x67   : > { %s4529_s0 = smov [#allocation9]   ;;  %s4384_s17 = scalar_lea.hbm %s5809_s11, 4096 }
  0x68   : > { %s489_s21 = sshll.u32 %s4529_s0, 4  ;;  %p4385_p13 = scmp.ne.s32.totalorder %s5809_s11, %s4384_s17  ;;  %s490_s21 = int_to_ptr.vmem [resolvable:$true] %s489_s21 }
  0x69   : > { %p4391_p9 = scmp.lt.u32.totalorder %s4384_s17, %s5809_s11 }
  0x6a   : > { %p4387_p5 = pnand %p4385_p13, %p4697_p0 }
  0x6c   : > { %p4388_p6 = pneg %p4387_p5 }
  0x6e   : > { %p4393_p10 = pnand %p4391_p9, %p4388_p6 }
  0x70   : > { %4396 = shalt.err (!%p4393_p10)
}
  0x71   : > { %s4397_s30 = scalar_lea.vmem %s490_s21, 4096  ;;  %p4405_p4 = scmp.lt.s32.totalorder %s490_s21, %s490_s21 }
  0x72   : > { %p4398_p1 = scmp.ne.s32.totalorder %s490_s21, %s4397_s30  ;;  %p4406_p7 = scmp.lt.s32.totalorder %s4397_s30, %s4397_s30 }
  0x74   : > { %p4400_p2 = pnand %p4398_p1, %p4697_p0  ;;  %p4407_p8 = por %p4406_p7, %p4405_p4 }
  0x76   : > { %p4401_p3 = pneg %p4400_p2 }
  0x78   : > { %p4408_p11 = pnand %p4407_p8, %p4401_p3 }
  0x7a   : > { %4411 = shalt.err (!%p4408_p11)
}
  0x7b   : > { %4198 = dma.hbm_to_vmem [thread:$0]  (!%p4683_p12), %s5809_s11, 4096, %s490_s21, [#allocation10], %s4527_s15, %s4527_s15, %s4528_s16  }
  0x7c   : > { %p5847_p13 = scmp.ne.s32.totalorder %s5843_s18, 0 }
  0x7d   : > { %p5848_p5 = scmp.eq.s32.totalorder (!%p5847_p13), %s4647_s25, 0 }
  0x7e   : > { %535 = sbr.rel (%p5847_p13) target bundleno = 2815 (0xaff), region = 80 }
  0x85   : > { %4485 = dma.done.wait (%p5848_p5), [#allocation4], 2048   ;;  %p5849_p0 = pmov %p5848_p5 }
  0x87   : > { %4487 = vsyncadd (%p5849_p0), [#allocation4], 4294965248  ;;  %p5850_p6 = pmov %p5849_p0 }
  0x88   : > { %p5851_p9 = pmov %p5849_p0 }
  0x89   : > { %4489 = dma.done.wait (%p5850_p6), [#allocation7], 5120  }
  0x8a   : > { %4491 = vsyncadd (%p5851_p9), [#allocation7], 4294962176  ;;  %p5852_p10 = pmov %p5849_p0 }
  0x8b   : > { %p5853_p12 = pmov %p5849_p0 }
  0x8c   : > { %4493 = dma.done.wait (%p5852_p10), [#allocation10], 4096  }
  0x8d   : > { %4495 = vsyncadd (%p5853_p12), [#allocation10], 4294963200  ;;  %p609_p1 = scmp.lt.s32.totalorder %s4647_s25, 1  ;;  %v4530_v0 = vmov 0.0   ;;  %v624_v2 = vld [vmem:[#allocation3 + $0x8] sm:$0xff]  ;;  %s4531_s0 = smov 96  }
  0x8e   : > { %707 = vmatprep.mubr.f32.mxu0 %v4530_v0  ;;  %778 = vmatprep.mubr.f32.mxu1 %v4530_v0  ;;  %v628_v3 = vld [vmem:[#allocation3 + $0x28] sm:$0xff]  ;;  %v626_v5 = vld [vmem:[#allocation3 + $0x18] sm:$0xff]  ;;  %v623_v7 = vld [vmem:[#allocation3] sm:$0xff]  ;;  %s4532_s21 = smov 64   ;;  %vm639_vm0 = vcmask 261120   ;;  %v4533_v31 = vmov 0.0|0.0  }
  0x8f   : > { %s610_s18 = scalar_select %p609_p1, %s4647_s25, 1  ;;  %v3662_v4 = vpack.c.bf16 %v628_v3, %v624_v2  ;;  %v630_v6 = vld [vmem:[#allocation3 + $0x38] sm:$0xff]  ;;  %v627_v9 = vld [vmem:[#allocation3 + $0x20] sm:$0xff]  ;;  %v625_v10 = vld [vmem:[#allocation3 + $0x10] sm:$0xff]  ;;  %vm4534_vm1 = vmmov 0   ;;  %vm1945_vm8 = vcmask 7168  }
  0x90   : > { %v3670_v8 = vpack.c.bf16 %v630_v6, %v626_v5  ;;  %v629_v11 = vld [vmem:[#allocation3 + $0x30] sm:$0xff]  ;;  %v3664_v12 = vpack.c.bf16 %v627_v9, %v623_v7  ;;  %v632_v14 = vld [vmem:[#allocation3 + $0x48] sm:$0xff]  ;;  %v634_v16 = vld [vmem:[#allocation3 + $0x58] sm:$0xff]  ;;  %s5854_s17 = sld [smem:[#allocation27_spill]]  ;;  %s4536_s30 = smov 1   ;;  %vm2765_vm12 = vcmask 15368  }
  0x91   : > { %s4790_s26 = sshll.u32 %s610_s18, 3  ;;  %3663 = vmatprep.subr.bf16.mxu0 %v3662_v4  ;;  %v3672_v13 = vpack.c.bf16 %v629_v11, %v625_v10  ;;  %v636_v15 = vld [vmem:[#allocation3 + $0x68] sm:$0xff]  ;;  %v638_v18 = vld [vmem:[#allocation3 + $0x78] sm:$0xff]  ;;  %v631_v19 = vld [vmem:[#allocation3 + $0x40] sm:$0xff]  ;;  %s4537_s19 = smov 127   ;;  %vm2831_vm13 = vcmask 64512  }
  0x92   : > { %s616_s16 = scalar_lea.vmem %s5799_s1, %s4790_s26  ;;  %3671 = vmatprep.subr.bf16.mxu1 %v3670_v8  ;;  %v3666_v17 = vpack.c.bf16 %v636_v15, %v632_v14  ;;  %v635_v20 = vld [vmem:[#allocation3 + $0x60] sm:$0xff]  ;;  %3665 = vmatpush1.bf16.msra.mxu0 %v3664_v12  ;;  %v3674_v21 = vpack.c.bf16 %v638_v18, %v634_v16  ;;  %v633_v23 = vld [vmem:[#allocation3 + $0x50] sm:$0xff]  ;;  %v1181_v27 = vld [vmem:[%s5803_s5] sm:$0xff]  ;;  %vm1971_vm14 = vcmask 15360   ;;  %s4538_s15 = smov 3   ;;  %vm1973_vm15 = vcmask 23552  }
  0x93   : > { %v622_v1 = vld [vmem:[%s616_s16] sm:$0xff]  ;;  %v3668_v22 = vpack.c.bf16 %v635_v20, %v631_v19  ;;  %v637_v24 = vld [vmem:[#allocation3 + $0x70] sm:$0xff]  ;;  %3673 = vmatpush1.bf16.msra.mxu1 %v3672_v13  ;;  %v1182_v28 = vld [vmem:[%s5803_s5 + $0x8] sm:$0xff]  ;;  %s5856_s16 = sld [smem:[#allocation25_spill]] }
  0x94   : > { %785 = vrot.lane.b32.xlu0 %v622_v1, %s4531_s0  ;;  %3667 = vmatprep.subr.bf16.mxu0 %v3666_v17  ;;  %v3676_v25 = vpack.c.bf16 %v637_v24, %v633_v23  ;;  %v3719_v30 = vpack.c.bf16 %v1182_v28, %v1181_v27  ;;  %v1183_v32 = vld [vmem:[%s5803_s5 + $0x10] sm:$0xff]  ;;  %v1184_v33 = vld [vmem:[%s5803_s5 + $0x18] sm:$0xff]  ;;  %v1185_v35 = vld [vmem:[%s5803_s5 + $0x20] sm:$0xff]  ;;  %s5857_s23 = sld [smem:[#allocation29_spill]] }
  0x95   : > { %3675 = vmatprep.subr.bf16.mxu1 %v3674_v21  ;;  %v3722_v34 = vpack.c.bf16 %v1184_v33, %v1183_v32  ;;  %v1186_v36 = vld [vmem:[%s5803_s5 + $0x28] sm:$0xff]  ;;  %v1187_v38 = vld [vmem:[%s5803_s5 + $0x30] sm:$0xff]  ;;  %v1188_v39 = vld [vmem:[%s5803_s5 + $0x38] sm:$0xff] }
  0x96   : > { %3669 = vmatpush1.bf16.msra.mxu0 %v3668_v22  ;;  %v3725_v37 = vpack.c.bf16 %v1186_v36, %v1185_v35  ;;  %v3728_v40 = vpack.c.bf16 %v1188_v39, %v1187_v38  ;;  %v1189_v41 = vld [vmem:[%s5803_s5 + $0x40] sm:$0xff]  ;;  %v1190_v42 = vld [vmem:[%s5803_s5 + $0x48] sm:$0xff]  ;;  %v1191_v44 = vld [vmem:[%s5803_s5 + $0x50] sm:$0xff]  ;;  %s612_s28 = scalar_lea.vmem %s5854_s17, %s4790_s26  ;;  %s620_s17 = scalar_lea.vmem %s5800_s2, %s4790_s26 }
  0x97   : > { %3677 = vmatpush1.bf16.msra.mxu1 %v3676_v25  ;;  %3679 = vmatprep.subr.bf16.mxu0 %v3662_v4  ;;  %v3731_v43 = vpack.c.bf16 %v1190_v42, %v1189_v41  ;;  %v1192_v45 = vld [vmem:[%s5803_s5 + $0x58] sm:$0xff]  ;;  %v1078_v46 = vld [vmem:[#allocation6 + $0x8] sm:$0xff]  ;;  %v1080_v48 = vld [vmem:[#allocation6 + $0x18] sm:$0xff]  ;;  %s5855_s26 = sld [smem:[#allocation20_spill]] }
  0x98   : > { %931 = vrot.lane.b32.xlu0 %v622_v1, %s4532_s21  ;;  %3687 = vmatprep.subr.bf16.mxu1 %v3670_v8  ;;  %v3734_v47 = vpack.c.bf16 %v1192_v45, %v1191_v44  ;;  %v1077_v49 = vld [vmem:[#allocation6] sm:$0xff]  ;;  %v1079_v50 = vld [vmem:[#allocation6 + $0x10] sm:$0xff]  ;;  %v3710_v51 = vpack.c.bf16 %v1080_v48, %v1078_v46  ;;  %v1193_v53 = vld [vmem:[%s5803_s5 + $0x60] sm:$0xff]  ;;  %s3235_s21 = sshll.u32 %s4647_s25, 5 }
  0x99   : > { %3112 = vmatmul.mubr.msk.f32.vlgmr.msra.gmra.mrb[0].mxu0 %vm639_vm0, %v622_v1  ;;  %v3712_v52 = vpack.c.bf16 %v1079_v50, %v1077_v49  ;;  %v1194_v54 = vld [vmem:[%s5803_s5 + $0x68] sm:$0xff]  ;;  %v1082_v55 = vld [vmem:[#allocation6 + $0x28] sm:$0xff]  ;;  %v1084_v56 = vld [vmem:[#allocation6 + $0x38] sm:$0xff]  ;;  %p5859_p3 = scmp.ne.s32.totalorder %s5856_s16, 0 }
  0x9a   : > { %3113 = vmatmul.mubr.msk.f32.vlgmr.msra.gmra.mrb[0].mxu1 %vm639_vm0, %v622_v1  ;;  %3681 = vmatpush1.bf16.msra.mxu0 %v3664_v12  ;;  %v1081_v57 = vld [vmem:[#allocation6 + $0x20] sm:$0xff]  ;;  %v1083_v58 = vld [vmem:[#allocation6 + $0x30] sm:$0xff]  ;;  %v3737_v59 = vpack.c.bf16 %v1194_v54, %v1193_v53  ;;  %v3714_v60 = vpack.c.bf16 %v1084_v56, %v1082_v55  ;;  %v1195_v62 = vld [vmem:[%s5803_s5 + $0x70] sm:$0xff]  ;;  %s5723_s20 = scalar_lea.hbm %s5857_s23, %s3235_s21 }
  0x9b   : > { %3689 = vmatpush1.bf16.msra.mxu1 %v3672_v13  ;;  %3683 = vmatprep.subr.bf16.mxu0 %v3666_v17  ;;  %v3716_v61 = vpack.c.bf16 %v1083_v58, %v1081_v57  ;;  %v1196_v63 = vld [vmem:[%s5803_s5 + $0x78] sm:$0xff]  ;;  %v621_v2 = vld [vmem:[%s612_s28] sm:$0xff]  ;;  %v1284_v33 = vld [vmem:[%s5805_s7 + $0x8] sm:$0xff] }
  0x9c   : > { %3691 = vmatprep.subr.bf16.mxu1 %v3674_v21  ;;  %853 = vmatprep.mubr.f32.mxu0 %v4530_v0  ;;  %v3740_v1 = vpack.c.bf16 %v1196_v63, %v1195_v62  ;;  %v1283_v36 = vld [vmem:[%s5805_s7] sm:$0xff]  ;;  %v1288_v39 = vld [vmem:[%s5805_s7 + $0x28] sm:$0xff]  ;;  %v1294_v46 = vld [vmem:[%s5805_s7 + $0x58] sm:$0xff] }
  0x9d   : > { %924 = vmatprep.mubr.f32.mxu1 %v4530_v0  ;;  %v1287_v42 = vld [vmem:[%s5805_s7 + $0x20] sm:$0xff]  ;;  %v1292_v45 = vld [vmem:[%s5805_s7 + $0x48] sm:$0xff]  ;;  %v1293_v49 = vld [vmem:[%s5805_s7 + $0x50] sm:$0xff]  ;;  %s5701_s4 = sand.u32 1, %s5855_s26   ;;  %s5858_s26 = smov %s5857_s23 }
  0x9e   : > { %3685 = vmatpush1.bf16.msra.mxu0 %v3668_v22  ;;  %v1291_v48 = vld [vmem:[%s5805_s7 + $0x40] sm:$0xff]  ;;  %v1297_v55 = vld [vmem:[%s5805_s7 + $0x70] sm:$0xff]  ;;  %v1300_v57 = vld [vmem:[%s5805_s7 + $0x88] sm:$0xff]  ;;  %s3108_s22 = sshll.u32 %s5701_s4, 3  ;;  %s3107_s0 = sshll.u32 %s5701_s4, 1 }
  0x9f   : > { %3693 = vmatpush1.bf16.msra.mxu1 %v3676_v25  ;;  %3695 = vmatprep.subr.bf16.mxu0 %v3662_v4  ;;  %v3752_v50 = vpack.c.bf16 %v1293_v49, %v1291_v48  ;;  %v1295_v54 = vld [vmem:[%s5805_s7 + $0x60] sm:$0xff]  ;;  %v1302_v58 = vld [vmem:[%s5805_s7 + $0x98] sm:$0xff]  ;;  %v1304_v63 = vld [vmem:[%s5805_s7 + $0xa8] sm:$0xff]  ;;  %s5704_s18 = scalar_lea.vmem [#allocation12], %s3108_s22  ;;  %s601_s24 = scalar_lea.vmem [#allocation11], %s3107_s0 }
  0xa0   : > { %3703 = vmatprep.subr.bf16.mxu1 %v3670_v8  ;;  %v3756_v56 = vpack.c.bf16 %v1297_v55, %v1295_v54  ;;  %v1417_v48 = vld [vmem:[%s5807_s9 + $0x60] sm:$0xff]  ;;  %1168 = vst [vmem:[%s5704_s18] sm:$0xff] %v4530_v0  ;;  %s2926_s27 = sshll.u32 %s601_s24, 4  ;;  %s2908_s29 = scalar_lea.sflag [#allocation5], %s5701_s4  ;;  %s5725_s27 = int_to_ptr.vmem [resolvable:$true] %s2926_s27 }
  0xa1   : > { %v1421_v54 = vld [vmem:[%s5807_s9 + $0x80] sm:$0xff]  ;;  %s4539_s22 = smov [#allocation11]  }
 0x106   : > { %v786_v26 = vpop.permute.xlu0 %785 }
 0x107   : > { %3114 = vmatmul.mubr.msk.f32.vlgmr.msra.gmra.mrb[2].mxu0 %vm639_vm0, %v786_v26  ;;  %3115 = vmatmul.mubr.msk.f32.vlgmr.msra.gmra.mrb[2].mxu1 %vm639_vm0, %v786_v26 }
 0x108   : > { %3697 = vmatpush1.bf16.msra.mxu0 %v3664_v12  ;;  %3705 = vmatpush1.bf16.msra.mxu1 %v3672_v13 }
 0x109   : > { %3699 = vmatprep.subr.bf16.mxu0 %v3666_v17  ;;  %3707 = vmatprep.subr.bf16.mxu1 %v3674_v21 }
 0x10a   : > { %999 = vmatprep.mubr.f32.mxu0 %v4530_v0  ;;  %1070 = vmatprep.mubr.f32.mxu1 %v4530_v0  ;;  %v932_v29 = vpop.permute.xlu0 %931 }
 0x10c   : > { %3701 = vmatpush1.bf16.msra.mxu0 %v3668_v22  ;;  %3709 = vmatpush1.bf16.msra.mxu1 %v3676_v25 }
 0x10d   : > { %3718 = vmatprep.subr.bf16.mxu1 %v4533_v31  ;;  %3711 = vmatprep.subr.bf16.mxu0 %v3710_v51  ;;  %v1296_v51 = vld [vmem:[%s5805_s7 + $0x68] sm:$0xff] }
 0x10f   : > { %3116 = vmatmul.mubr.msk.f32.vlgmr.msra.gmra.mrb[4].mxu0 %vm639_vm0, %v932_v29  ;;  %3117 = vmatmul.mubr.msk.f32.vlgmr.msra.gmra.mrb[4].mxu1 %vm639_vm0, %v932_v29 }
 0x110   : > { %3720 = vmatpush3.bf16.msra.mxu1 %v3719_v30  ;;  %1152 = vmatprep.mubr.f32.mxu0 %v4530_v0 }
 0x111   : > { %3721 = vmatprep.subr.bf16.mxu1 %v4533_v31  ;;  %3409 = vmatprep.mubr.msk.f32.mxu1 %vm4534_vm1, %v4530_v0 }
 0x112   : > { %3713 = vmatpush1.bf16.msra.mxu0 %v3712_v52  ;;  %v1298_v52 = vld [vmem:[%s5805_s7 + $0x78] sm:$0xff] }
 0x113   : > { %3715 = vmatprep.subr.bf16.mxu0 %v3714_v60  ;;  %v3754_v53 = vpack.c.bf16 %v1298_v52, %v1296_v51  ;;  %v1299_v60 = vld [vmem:[%s5805_s7 + $0x80] sm:$0xff]  ;;  %v1422_v52 = vld [vmem:[%s5807_s9 + $0x88] sm:$0xff] }
 0x114   : > { %3723 = vmatpush3.bf16.msra.mxu1 %v3722_v34  ;;  %v1286_v34 = vld [vmem:[%s5805_s7 + $0x18] sm:$0xff] }
 0x115   : > { %3724 = vmatprep.subr.bf16.mxu1 %v4533_v31  ;;  %v3742_v35 = vpack.c.bf16 %v1286_v34, %v1284_v33  ;;  %v1410_v33 = vld [vmem:[%s5807_s9 + $0x28] sm:$0xff]  ;;  %v1412_v34 = vld [vmem:[%s5807_s9 + $0x38] sm:$0xff] }
 0x116   : > { %3717 = vmatpush1.bf16.msra.mxu0 %v3716_v61  ;;  %v1301_v61 = vld [vmem:[%s5805_s7 + $0x90] sm:$0xff] }
 0x117   : > { %3743 = vmatprep.subr.bf16.mxu0 %v3742_v35  ;;  %v3760_v62 = vpack.c.bf16 %v1301_v61, %v1299_v60  ;;  %v1425_v60 = vld [vmem:[%s5807_s9 + $0xa0] sm:$0xff] }
 0x118   : > { %3726 = vmatpush3.bf16.msra.mxu1 %v3725_v37  ;;  %v1285_v37 = vld [vmem:[%s5805_s7 + $0x10] sm:$0xff] }
 0x119   : > { %3727 = vmatprep.subr.bf16.mxu1 %v4533_v31  ;;  %3118 = vmatmul.mubr.msk.f32.vlgmr.msra.gmra.mrb[6].mxu0 %vm639_vm0, %v621_v2  ;;  %v3744_v38 = vpack.c.bf16 %v1285_v37, %v1283_v36  ;;  %v5008_v36 = vpack.c.bf16 %v1412_v34, %v1410_v33  ;;  %v1409_v37 = vld [vmem:[%s5807_s9 + $0x20] sm:$0xff]  ;;  %v1160_v33 = vlaneseq  ;;  %vm2905_vm0 = vcmask 9216  }
 0x11a   : > { %1391 = vmatprep.mubr.f32.mxu0 %v4530_v0 }
 0x11b   : > { %3745 = vmatpush1.bf16.msra.mxu0 %v3744_v38  ;;  %v1411_v38 = vld [vmem:[%s5807_s9 + $0x30] sm:$0xff]  ;;  %v5146_v34 = vshrl.u32 %v1160_v33, 7 }
 0x11c   : > { %3729 = vmatpush3.bf16.msra.mxu1 %v3728_v40  ;;  %v1290_v40 = vld [vmem:[%s5805_s7 + $0x38] sm:$0xff] }
 0x11d   : > { %3730 = vmatprep.subr.bf16.mxu1 %v4533_v31  ;;  %v3746_v41 = vpack.c.bf16 %v1290_v40, %v1288_v39  ;;  %v5019_v39 = vpack.c.bf16 %v1411_v38, %v1409_v37  ;;  %v1414_v40 = vld [vmem:[%s5807_s9 + $0x48] sm:$0xff]  ;;  %v1323_v37 = vsub.s32 1, %v5146_v34  ;;  %v1315_v38 = vld [vmem:[%s5806_s8] sm:$0x3] }
 0x11f   : > { %3747 = vmatprep.subr.bf16.mxu0 %v3746_v41  ;;  %v1416_v41 = vld [vmem:[%s5807_s9 + $0x58] sm:$0xff] }
 0x120   : > { %3732 = vmatpush3.bf16.msra.mxu1 %v3731_v43  ;;  %v1289_v43 = vld [vmem:[%s5805_s7 + $0x30] sm:$0xff] }
 0x121   : > { %3733 = vmatprep.subr.bf16.mxu1 %v4533_v31  ;;  %v3748_v44 = vpack.c.bf16 %v1289_v43, %v1287_v42  ;;  %v1413_v42 = vld [vmem:[%s5807_s9 + $0x40] sm:$0xff]  ;;  %v5031_v43 = vpack.c.bf16 %v1416_v41, %v1414_v40  ;;  %v1324_v40 = vrot.slane %v1315_v38, %v1323_v37 }
 0x123   : > { %3749 = vmatpush1.bf16.msra.mxu0 %v3748_v44  ;;  %v1415_v44 = vld [vmem:[%s5807_s9 + $0x50] sm:$0xff] }
 0x124   : > { %3735 = vmatpush3.bf16.msra.mxu1 %v3734_v47  ;;  %v3750_v47 = vpack.c.bf16 %v1294_v46, %v1292_v45  ;;  %v5037_v45 = vpack.c.bf16 %v1415_v44, %v1413_v42  ;;  %v1418_v46 = vld [vmem:[%s5807_s9 + $0x68] sm:$0xff] }
 0x125   : > { %3736 = vmatprep.subr.bf16.mxu1 %v4533_v31 }
 0x126   : > { %3751 = vmatprep.subr.bf16.mxu0 %v3750_v47  ;;  %v1420_v47 = vld [vmem:[%s5807_s9 + $0x78] sm:$0xff] }
 0x127   : > { %3753 = vmatpush1.bf16.msra.mxu0 %v3752_v50  ;;  %v5049_v49 = vpack.c.bf16 %v1420_v47, %v1418_v46  ;;  %v1419_v50 = vld [vmem:[%s5807_s9 + $0x70] sm:$0xff] }
 0x128   : > { %3738 = vmatpush3.bf16.msra.mxu1 %v3737_v59  ;;  %3755 = vmatprep.subr.bf16.mxu0 %v3754_v53  ;;  %v3758_v59 = vpack.c.bf16 %v1302_v58, %v1300_v57  ;;  %v5055_v51 = vpack.c.bf16 %v1419_v50, %v1417_v48  ;;  %v1424_v53 = vld [vmem:[%s5807_s9 + $0x98] sm:$0xff]  ;;  %v1426_v58 = vld [vmem:[%s5807_s9 + $0xa8] sm:$0xff]  ;;  %v1668_v48 = vld [vmem:[#allocation8 + $0x18] sm:$0xff] }
 0x129   : > { %3739 = vmatprep.subr.bf16.mxu1 %v4533_v31  ;;  %v5067_v55 = vpack.c.bf16 %v1424_v53, %v1422_v52  ;;  %v1669_v50 = vld [vmem:[#allocation8 + $0x20] sm:$0xff]  ;;  %v1671_v53 = vld [vmem:[#allocation8 + $0x30] sm:$0xff] }
 0x12b   : > { %3757 = vmatpush1.bf16.msra.mxu0 %v3756_v56  ;;  %v1423_v56 = vld [vmem:[%s5807_s9 + $0x90] sm:$0xff] }
 0x12c   : > { %3741 = vmatpush3.bf16.msra.mxu1 %v3740_v1  ;;  %3759 = vmatprep.subr.bf16.mxu0 %v3758_v59  ;;  %v1306_v1 = vld [vmem:[%s5805_s7 + $0xb8] sm:$0xff]  ;;  %v5073_v57 = vpack.c.bf16 %v1423_v56, %v1421_v54  ;;  %v1672_v54 = vld [vmem:[#allocation8 + $0x38] sm:$0xff] }
 0x12d   : > { %v3762_v2 = vpack.c.bf16 %v1306_v1, %v1304_v63  ;;  %v1428_v59 = vld [vmem:[%s5807_s9 + $0xb8] sm:$0xff]  ;;  %v1430_v1 = vld [vmem:[%s5807_s9 + $0xc8] sm:$0xff] }
 0x12e   : > { %v5085_v61 = vpack.c.bf16 %v1428_v59, %v1426_v58  ;;  %v1674_v58 = vld [vmem:[#allocation8 + $0x48] sm:$0xff] }
 0x12f   : > { %3761 = vmatpush1.bf16.msra.mxu0 %v3760_v62  ;;  %v1427_v62 = vld [vmem:[%s5807_s9 + $0xb0] sm:$0xff] }
 0x130   : > { %3763 = vmatprep.subr.bf16.mxu0 %v3762_v2  ;;  %v5091_v63 = vpack.c.bf16 %v1427_v62, %v1425_v60  ;;  %v1432_v2 = vld [vmem:[%s5807_s9 + $0xd8] sm:$0xff]  ;;  %v1676_v62 = vld [vmem:[#allocation8 + $0x58] sm:$0xff] }
 0x16c   : > { %v709_v3 = vpop.f32.mrb[0].mxu0 }
 0x16d   : > { %v4869_v4 = vpop.f32.mrb[1].mxu0  ;;  %v780_v5 = vpop.f32.mrb[0].mxu1  ;;  %v1169_v10 = vmul.f32 %v709_v3, %v709_v3  ;;  %v1303_v3 = vld [vmem:[%s5805_s7 + $0xa0] sm:$0xff] }
 0x16e   : > { %v4871_v6 = vpop.f32.mrb[1].mxu1  ;;  %v1975_v7 = vmul.f32 %v780_v5, %v780_v5  ;;  %v1305_v5 = vld [vmem:[%s5805_s7 + $0xb0] sm:$0xff] }
 0x1da   : > { %v855_v8 = vpop.f32.mrb[2].mxu0  ;;  %v926_v9 = vpop.f32.mrb[2].mxu1 }
 0x1db   : > { %v1170_v11 = vmul.f32 %v855_v8, %v855_v8  ;;  %v1976_v12 = vmul.f32 %v926_v9, %v926_v9  ;;  %v4875_v13 = vpop.f32.mrb[3].mxu0  ;;  %v4877_v14 = vpop.f32.mrb[3].mxu1  ;;  %v1308_v8 = vld [vmem:[%s5805_s7 + $0xc8] sm:$0xff]  ;;  %v1310_v9 = vld [vmem:[%s5805_s7 + $0xd8] sm:$0xff] }
 0x1dd   : > { %v1171_v15 = vadd.f32 %v1170_v11, %v1169_v10  ;;  %v1977_v16 = vadd.f32 %v1976_v12, %v1975_v7  ;;  %v3764_v7 = vpack.c.bf16 %v1305_v5, %v1303_v3  ;;  %v3766_v10 = vpack.c.bf16 %v1310_v9, %v1308_v8  ;;  %v1307_v11 = vld [vmem:[%s5805_s7 + $0xc0] sm:$0xff]  ;;  %v1309_v12 = vld [vmem:[%s5805_s7 + $0xd0] sm:$0xff] }
 0x1de   : > { %v1429_v3 = vld [vmem:[%s5807_s9 + $0xc0] sm:$0xff]  ;;  %v5103_v5 = vpack.c.bf16 %v1432_v2, %v1430_v1  ;;  %v1677_v1 = vld [vmem:[#allocation8 + $0x60] sm:$0xff]  ;;  %v1678_v2 = vld [vmem:[#allocation8 + $0x68] sm:$0xff] }
 0x1df   : > { %3765 = vmatpush1.bf16.msra.mxu0 %v3764_v7  ;;  %v1431_v7 = vld [vmem:[%s5807_s9 + $0xd0] sm:$0xff] }
 0x1e0   : > { %3767 = vmatprep.subr.bf16.mxu0 %v3766_v10  ;;  %v5109_v8 = vpack.c.bf16 %v1431_v7, %v1429_v3  ;;  %v3120_v10 = vld [vmem:[%s5804_s6] ss:$0 sm:$0xff]  ;;  %v3913_v3 = vpack.c.bf16 %v1678_v2, %v1677_v1  ;;  %v1693_v2 = vld [vmem:[#allocation9 + $0x60] sm:$0xff] }
 0x1e1   : > { %v1680_v7 = vld [vmem:[#allocation8 + $0x78] sm:$0xff] }
 0x1e2   : > { %v1001_v17 = vpop.f32.mrb[4].mxu0  ;;  %v1072_v18 = vpop.f32.mrb[4].mxu1 }
 0x1e3   : > { %v1172_v19 = vmul.f32 %v1001_v17, %v1001_v17  ;;  %v1978_v20 = vmul.f32 %v1072_v18, %v1072_v18  ;;  %v4879_v21 = vpop.f32.mrb[5].mxu0  ;;  %v4881_v22 = vpop.f32.mrb[5].mxu1  ;;  %v1314_v17 = vld [vmem:[%s5805_s7 + $0xf8] sm:$0xff] }
 0x1e5   : > { %v1173_v23 = vadd.f32 %v1172_v19, %v1171_v15  ;;  %v4883_v24 = vadd.f32 %v1978_v20, %v1977_v16  ;;  %v3768_v15 = vpack.c.bf16 %v1309_v12, %v1307_v11  ;;  %v1312_v16 = vld [vmem:[%s5805_s7 + $0xe8] sm:$0xff]  ;;  %v1311_v19 = vld [vmem:[%s5805_s7 + $0xe0] sm:$0xff]  ;;  %v1313_v20 = vld [vmem:[%s5805_s7 + $0xf0] sm:$0xff] }
 0x1e6   : > { %v3770_v18 = vpack.c.bf16 %v1314_v17, %v1312_v16 }
 0x1e7   : > { %4268 = vrsqrt.f32 %v1173_v23  ;;  %vm1176_vm2 = vcmp.eq.f32.partialorder %v1173_v23, inf  ;;  %v1179_v27 = vand.u32 2147483648, %v1173_v23  ;;  %vm1178_vm3 = vcmp.eq.f32.partialorder %v1173_v23, 0.0  ;;  %3769 = vmatpush1.bf16.msra.mxu0 %v3768_v15 }
 0x1e8   : > { %3771 = vmatprep.subr.bf16.mxu0 %v3770_v18  ;;  %vm1982_vm4 = vcmp.eq.f32.partialorder %v4883_v24, inf  ;;  %vm1984_vm5 = vcmp.eq.f32.partialorder %v4883_v24, 0.0 }
 0x1ec   : > { %v4886_v30 = vpop.f32.mrb[6].mxu0 }
 0x1ed   : > { %v4888_v32 = vpop.f32.mrb[7].mxu0 }
 0x1f1   : > { %v4269_v25 = vpop.eup %4268 }
 0x1f2   : > { %v1175_v26 = vmul.f32 %v4269_v25, %v1173_v23  ;;  %v1406_v25 = vld [vmem:[%s5807_s9 + $0x8] sm:$0xff] }
 0x1f4   : > { %v1177_v28 = vsel %vm1176_vm2, %v1173_v23, %v1175_v26  ;;  %v3772_v23 = vpack.c.bf16 %v1313_v20, %v1311_v19  ;;  %v1408_v26 = vld [vmem:[%s5807_s9 + $0x18] sm:$0xff] }
 0x1f5   : > { %v1180_v29 = vsel %vm1178_vm3, %v1179_v27, %v1177_v28  ;;  %v1405_v27 = vld [vmem:[%s5807_s9] sm:$0xff]  ;;  %v4995_v28 = vpack.c.bf16 %v1408_v26, %v1406_v25 }
 0x1f6   : > { %3410 = vmatmul.mubr.f32.vlgmr.msra.gmra.mrb[6].mxu1 %v1180_v29  ;;  %3773 = vmatpush1.bf16.msra.mxu0 %v3772_v23  ;;  %v1407_v29 = vld [vmem:[%s5807_s9 + $0x10] sm:$0xff]  ;;  %v1436_v23 = vld [vmem:[%s5807_s9 + $0xf8] sm:$0xff]  ;;  %v1433_v26 = vld [vmem:[%s5807_s9 + $0xe0] sm:$0xff] }
 0x1f7   : > { %1502 = vmatprep.mubr.f32.mxu1 %v4530_v0  ;;  %v5006_v35 = vpack.c.bf16 %v1407_v29, %v1405_v27  ;;  %3775 = vmatprep.subr.bf16.mxu1 %v4995_v28  ;;  %v1435_v27 = vld [vmem:[%s5807_s9 + $0xf0] sm:$0xff] }
 0x1f8   : > { %3807 = vmatprep.subr.bf16.mxu0 %v4995_v28  ;;  %v3804_v29 = vpack.c.bf16 %v1435_v27, %v1433_v26  ;;  %v3134_v27 = vld [vmem:[%s5803_s5 + $0xc0] sm:$0xff] }
 0x1f9   : > { %3777 = vmatpush1.bf16.msra.mxu1 %v5006_v35 }
 0x1fa   : > { %3779 = vmatprep.subr.bf16.mxu1 %v5008_v36 }
 0x1fd   : > { %3781 = vmatpush1.bf16.msra.mxu1 %v5019_v39 }
 0x1fe   : > { %3783 = vmatprep.subr.bf16.mxu1 %v5031_v43 }
 0x201   : > { %3785 = vmatpush1.bf16.msra.mxu1 %v5037_v45 }
 0x202   : > { %3787 = vmatprep.subr.bf16.mxu1 %v5049_v49 }
 0x205   : > { %3789 = vmatpush1.bf16.msra.mxu1 %v5055_v51 }
 0x206   : > { %3791 = vmatprep.subr.bf16.mxu1 %v5067_v55 }
 0x209   : > { %3793 = vmatpush1.bf16.msra.mxu1 %v5073_v57 }
 0x20a   : > { %3795 = vmatprep.subr.bf16.mxu1 %v5085_v61 }
 0x20d   : > { %3797 = vmatpush1.bf16.msra.mxu1 %v5091_v63 }
 0x20e   : > { %3799 = vmatprep.subr.bf16.mxu1 %v5103_v5 }
 0x211   : > { %3801 = vmatpush1.bf16.msra.mxu1 %v5109_v8 }
 0x2c9   : > { %v1263_v9 = vpop.f32.mrb[6].mxu1 }
 0x2ca   : > { %v1267_v11 = vadd.f32 %v1263_v9, %v4886_v30  ;;  %v3411_v12 = vpop.f32.mrb[7].mxu1  ;;  %v1434_v30 = vld [vmem:[%s5807_s9 + $0xe8] sm:$0xff]  ;;  %v3126_v9 = vld [vmem:[%s5803_s5 + $0x80] sm:$0xff] }
 0x2cb   : > { %v3802_v25 = vpack.c.bf16 %v1436_v23, %v1434_v30  ;;  %v3132_v23 = vld [vmem:[%s5803_s5 + $0xb0] sm:$0xff] }
 0x2cc   : > { %v1275_v15 = vadd.f32 %v3120_v10, %v1267_v11  ;;  %v3127_v10 = vld [vmem:[%s5803_s5 + $0x88] sm:$0xff] }
 0x2cd   : > { %3803 = vmatprep.subr.bf16.mxu1 %v3802_v25  ;;  %v3943_v12 = vpack.c.bf16 %v3127_v10, %v3126_v9 }
 0x2ce   : > { %v3121_v16 = vmul.f32 -1.442695, %v1275_v15  ;;  %3805 = vmatpush1.bf16.msra.mxu1 %v3804_v29 }
 0x2cf   : > { %3839 = vmatprep.subr.bf16.mxu1 %v4995_v28 }
 0x2d0   : > { %4270 = vpow2.f32 %v3121_v16  ;;  %v3128_v16 = vld [vmem:[%s5803_s5 + $0x90] sm:$0xff] }
 0x2da   : > { %v4271_v17 = vpop.eup %4270 }
 0x2db   : > { %v1279_v18 = vadd.f32 1.0, %v4271_v17  ;;  %v3129_v17 = vld [vmem:[%s5803_s5 + $0x98] sm:$0xff] }
 0x2dd   : > { %4272 = vrcp.f32 %v1279_v18  ;;  %v3946_v18 = vpack.c.bf16 %v3129_v17, %v3128_v16 }
 0x2e7   : > { %v4273_v19 = vpop.eup %4272 }
 0x2e8   : > { %v1282_v20 = vmul.f32 %v4273_v19, %v1275_v15  ;;  %v3130_v19 = vld [vmem:[%s5803_s5 + $0xa0] sm:$0xff] }
 0x2ea   : > { %1392 = vmatmul.mubr.f32.vlgmr.msra.gmra.mrb[8].mxu0 %v1282_v20  ;;  %v3131_v20 = vld [vmem:[%s5803_s5 + $0xa8] sm:$0xff] }
 0x2eb   : > { %3809 = vmatpush1.bf16.msra.mxu0 %v5006_v35  ;;  %1574 = vmatprep.mubr.f32.mxu0 %v4530_v0  ;;  %v3949_v30 = vpack.c.bf16 %v3131_v20, %v3130_v19 }
 0x2ec   : > { %3811 = vmatprep.subr.bf16.mxu0 %v5008_v36 }
 0x2ef   : > { %3813 = vmatpush1.bf16.msra.mxu0 %v5019_v39 }
 0x2f0   : > { %3815 = vmatprep.subr.bf16.mxu0 %v5031_v43 }
 0x2f3   : > { %3817 = vmatpush1.bf16.msra.mxu0 %v5037_v45 }
 0x2f4   : > { %3819 = vmatprep.subr.bf16.mxu0 %v5049_v49 }
 0x2f7   : > { %3821 = vmatpush1.bf16.msra.mxu0 %v5055_v51 }
 0x2f8   : > { %3823 = vmatprep.subr.bf16.mxu0 %v5067_v55 }
 0x2fb   : > { %3825 = vmatpush1.bf16.msra.mxu0 %v5073_v57 }
 0x2fc   : > { %3827 = vmatprep.subr.bf16.mxu0 %v5085_v61 }
 0x2ff   : > { %3829 = vmatpush1.bf16.msra.mxu0 %v5091_v63 }
 0x300   : > { %3831 = vmatprep.subr.bf16.mxu0 %v5103_v5 }
 0x303   : > { %3833 = vmatpush1.bf16.msra.mxu0 %v5109_v8 }
 0x304   : > { %3835 = vmatprep.subr.bf16.mxu0 %v3802_v25 }
 0x307   : > { %3837 = vmatpush1.bf16.msra.mxu0 %v3804_v29 }
 0x308   : > { %3870 = vmatprep.subr.bf16.mxu0 %v4533_v31 }
 0x3bd   : > { %v1393_v41 = vpop.f32.mrb[8].mxu0 }
 0x3be   : > { %v1395_v42 = vpop.f32.mrb[9].mxu0 }
 0x3bf   : > { %v1396_v44 = vadd.f32 %v1395_v42, %v1324_v40  ;;  %v3136_v40 = vld [vmem:[%s5803_s5 + $0xd0] sm:$0xff] }
 0x3c1   : > { %v1437_v28 = vmul.f32 %v1396_v44, %v4869_v4  ;;  %v1509_v46 = vmul.f32 %v1396_v44, %v4875_v13  ;;  %v1581_v47 = vmul.f32 %v1396_v44, %v4879_v21  ;;  %v1319_v4 = vsub.s32 0, %v5146_v34  ;;  %v3138_v44 = vld [vmem:[%s5803_s5 + $0xe0] sm:$0xff]  ;;  %v2481_v34 = vld [vmem:[#allocation8 + $0xa0] sm:$0xff] }
 0x3c3   : > { %1503 = vmatmul.mubr.f32.vlgmr.msra.gmra.mrb[8].mxu1 %v1437_v28  ;;  %1575 = vmatmul.mubr.f32.vlgmr.msra.gmra.mrb[10].mxu0 %v1509_v46  ;;  %v1320_v13 = vrot.slane %v1315_v38, %v1319_v4  ;;  %v3139_v28 = vld [vmem:[%s5803_s5 + $0xe8] sm:$0xff] }
 0x3c4   : > { %3841 = vmatpush1.bf16.msra.mxu1 %v5006_v35  ;;  %1646 = vmatprep.mubr.f32.mxu1 %v4530_v0  ;;  %v1665_v35 = vld [vmem:[#allocation8] sm:$0xff] }
 0x3c5   : > { %3843 = vmatprep.subr.bf16.mxu1 %v5008_v36  ;;  %3444 = vmatprep.mubr.msk.f32.mxu0 %vm4534_vm1, %v4530_v0  ;;  %v1394_v21 = vadd.f32 %v1393_v41, %v1320_v13  ;;  %v1666_v36 = vld [vmem:[#allocation8 + $0x8] sm:$0xff]  ;;  %v3137_v41 = vld [vmem:[%s5803_s5 + $0xd8] sm:$0xff] }
 0x3c6   : > { %v3958_v42 = vpack.c.bf16 %v3137_v41, %v3136_v40  ;;  %v3140_v13 = vld [vmem:[%s5803_s5 + $0xf0] sm:$0xff] }
 0x3c8   : > { %3845 = vmatpush1.bf16.msra.mxu1 %v5019_v39  ;;  %v3122_v39 = vmul.f32 -1.442695, %v1394_v21 }
 0x3c9   : > { %3847 = vmatprep.subr.bf16.mxu1 %v5031_v43  ;;  %v3895_v43 = vpack.c.bf16 %v1666_v36, %v1665_v35  ;;  %v1681_v35 = vld [vmem:[#allocation9] sm:$0xff]  ;;  %v1682_v36 = vld [vmem:[#allocation9 + $0x8] sm:$0xff] }
 0x3ca   : > { %4274 = vpow2.f32 %v3122_v39  ;;  %v1683_v39 = vld [vmem:[#allocation9 + $0x10] sm:$0xff] }
 0x3cc   : > { %3849 = vmatpush1.bf16.msra.mxu1 %v5037_v45  ;;  %v1667_v45 = vld [vmem:[#allocation8 + $0x10] sm:$0xff] }
 0x3cd   : > { %3851 = vmatprep.subr.bf16.mxu1 %v5049_v49  ;;  %v3898_v49 = vpack.c.bf16 %v1668_v48, %v1667_v45  ;;  %v1684_v45 = vld [vmem:[#allocation9 + $0x18] sm:$0xff] }
 0x3d0   : > { %3853 = vmatpush1.bf16.msra.mxu1 %v5055_v51  ;;  %v1670_v51 = vld [vmem:[#allocation8 + $0x28] sm:$0xff] }
 0x3d1   : > { %3855 = vmatprep.subr.bf16.mxu1 %v5067_v55  ;;  %v3901_v52 = vpack.c.bf16 %v1670_v51, %v1669_v50  ;;  %v3904_v55 = vpack.c.bf16 %v1672_v54, %v1671_v53  ;;  %v3874_v50 = vpack.c.bf16 %v1684_v45, %v1683_v39  ;;  %v1685_v51 = vld [vmem:[#allocation9 + $0x20] sm:$0xff]  ;;  %v1985_v54 = vand.u32 2147483648, %v4883_v24  ;;  %v1858_v45 = vld [vmem:[%s5811_s13 + $0x30] sm:$0xff] }
 0x3d2   : > { %v1857_v39 = vld [vmem:[%s5811_s13 + $0x28] sm:$0xff] }
 0x3d4   : > { %3857 = vmatpush1.bf16.msra.mxu1 %v5073_v57  ;;  %v4275_v56 = vpop.eup %4274  ;;  %v1673_v57 = vld [vmem:[#allocation8 + $0x40] sm:$0xff] }
 0x3d5   : > { %3859 = vmatprep.subr.bf16.mxu1 %v5085_v61  ;;  %v1401_v59 = vadd.f32 1.0, %v4275_v56  ;;  %v3907_v60 = vpack.c.bf16 %v1674_v58, %v1673_v57  ;;  %v1675_v61 = vld [vmem:[#allocation8 + $0x50] sm:$0xff]  ;;  %v1688_v58 = vld [vmem:[#allocation9 + $0x38] sm:$0xff] }
 0x3d6   : > { %v1687_v57 = vld [vmem:[#allocation9 + $0x30] sm:$0xff] }
 0x3d7   : > { %4276 = vrcp.f32 %v1401_v59  ;;  %v3880_v59 = vpack.c.bf16 %v1688_v58, %v1687_v57  ;;  %v1865_v57 = vld [vmem:[%s5811_s13 + $0x68] sm:$0xff] }
 0x3d8   : > { %3861 = vmatpush1.bf16.msra.mxu1 %v5091_v63  ;;  %v3910_v63 = vpack.c.bf16 %v1676_v62, %v1675_v61  ;;  %4278 = vrsqrt.f32 %v4883_v24  ;;  %v1690_v61 = vld [vmem:[#allocation9 + $0x48] sm:$0xff] }
 0x3d9   : > { %3863 = vmatprep.subr.bf16.mxu1 %v5103_v5  ;;  %v1679_v5 = vld [vmem:[#allocation8 + $0x70] sm:$0xff] }
 0x3dc   : > { %3865 = vmatpush1.bf16.msra.mxu1 %v5109_v8  ;;  %v3916_v8 = vpack.c.bf16 %v1680_v7, %v1679_v5  ;;  %v1695_v7 = vld [vmem:[#allocation9 + $0x70] sm:$0xff] }
 0x3dd   : > { %3867 = vmatprep.subr.bf16.mxu1 %v3802_v25  ;;  %v3133_v25 = vld [vmem:[%s5803_s5 + $0xb8] sm:$0xff] }
 0x3de   : > { %v3952_v26 = vpack.c.bf16 %v3133_v25, %v3132_v23 }
 0x3e0   : > { %3869 = vmatpush1.bf16.msra.mxu1 %v3804_v29  ;;  %v3135_v29 = vld [vmem:[%s5803_s5 + $0xc8] sm:$0xff] }
 0x3e1   : > { %3894 = vmatprep.subr.bf16.mxu1 %v4533_v31  ;;  %v4277_v11 = vpop.eup %4276  ;;  %v3955_v38 = vpack.c.bf16 %v3135_v29, %v3134_v27 }
 0x3e2   : > { %v1404_v15 = vmul.f32 %v4277_v11, %v1394_v21  ;;  %v4279_v46 = vpop.eup %4278  ;;  %v3141_v21 = vld [vmem:[%s5803_s5 + $0xf8] sm:$0xff] }
 0x3e3   : > { %1647 = vmatmul.mubr.f32.vlgmr.msra.gmra.mrb[10].mxu1 %v1581_v47  ;;  %v3961_v47 = vpack.c.bf16 %v3139_v28, %v3138_v44  ;;  %v1981_v48 = vmul.f32 %v4279_v46, %v4883_v24  ;;  %v1852_v46 = vld [vmem:[%s5811_s13] sm:$0xff] }
 0x3e4   : > { %3896 = vmatpush3.bf16.msra.mxu1 %v3895_v43  ;;  %3479 = vmatprep.mubr.msk.f32.mxu1 %vm4534_vm1, %v4530_v0  ;;  %v3871_v43 = vpack.c.bf16 %v1682_v36, %v1681_v35  ;;  %v1856_v36 = vld [vmem:[%s5811_s13 + $0x20] sm:$0xff] }
 0x3e5   : > { %3897 = vmatprep.subr.bf16.mxu1 %v4533_v31  ;;  %v1983_v53 = vsel %vm1982_vm4, %v4883_v24, %v1981_v48  ;;  %v1691_v24 = vld [vmem:[#allocation9 + $0x50] sm:$0xff] }
 0x3e6   : > { %3872 = vmatpush3.bf16.msra.mxu0 %v3871_v43  ;;  %v1986_v56 = vsel %vm1984_vm5, %v1985_v54, %v1983_v53  ;;  %v3925_v43 = vpack.c.bf16 %v1857_v39, %v1856_v36  ;;  %v1859_v48 = vld [vmem:[%s5811_s13 + $0x38] sm:$0xff]  ;;  %v1862_v53 = vld [vmem:[%s5811_s13 + $0x50] sm:$0xff]  ;;  %v3157_v36 = vld [vmem:[%s5805_s7 + $0x160] sm:$0xff] }
 0x3e7   : > { %3873 = vmatprep.subr.bf16.mxu0 %v4533_v31  ;;  %v1863_v54 = vld [vmem:[%s5811_s13 + $0x58] sm:$0xff]  ;;  %v3159_v39 = vld [vmem:[%s5805_s7 + $0x170] sm:$0xff] }
 0x3e8   : > { %3899 = vmatpush3.bf16.msra.mxu1 %v3898_v49  ;;  %v3964_v49 = vpack.c.bf16 %v3141_v21, %v3140_v13  ;;  %v1854_v21 = vld [vmem:[%s5811_s13 + $0x10] sm:$0xff] }
 0x3e9   : > { %3900 = vmatprep.subr.bf16.mxu1 %v4533_v31 }
 0x3ea   : > { %3875 = vmatpush3.bf16.msra.mxu0 %v3874_v50  ;;  %v1860_v50 = vld [vmem:[%s5811_s13 + $0x40] sm:$0xff] }
 0x3eb   : > { %3876 = vmatprep.subr.bf16.mxu0 %v4533_v31 }
 0x3ec   : > { %3902 = vmatpush3.bf16.msra.mxu1 %v3901_v52  ;;  %v1686_v52 = vld [vmem:[#allocation9 + $0x28] sm:$0xff] }
 0x3ed   : > { %3903 = vmatprep.subr.bf16.mxu1 %v4533_v31 }
 0x3f0   : > { %3905 = vmatpush3.bf16.msra.mxu1 %v3904_v55  ;;  %v3877_v55 = vpack.c.bf16 %v1686_v52, %v1685_v51  ;;  %v1861_v51 = vld [vmem:[%s5811_s13 + $0x48] sm:$0xff] }
 0x3f1   : > { %3906 = vmatprep.subr.bf16.mxu1 %v4533_v31  ;;  %v3931_v52 = vpack.c.bf16 %v1861_v51, %v1860_v50  ;;  %v3161_v51 = vld [vmem:[%s5805_s7 + $0x180] sm:$0xff] }
 0x3f2   : > { %3878 = vmatpush3.bf16.msra.mxu0 %v3877_v55  ;;  %v3934_v55 = vpack.c.bf16 %v1863_v54, %v1862_v53  ;;  %v3166_v53 = vld [vmem:[%s5805_s7 + $0x1a8] sm:$0xff]  ;;  %v3168_v54 = vld [vmem:[%s5805_s7 + $0x1b8] sm:$0xff] }
 0x3f3   : > { %3879 = vmatprep.subr.bf16.mxu0 %v4533_v31 }
 0x3f4   : > { %3908 = vmatpush3.bf16.msra.mxu1 %v3907_v60  ;;  %v1689_v60 = vld [vmem:[#allocation9 + $0x40] sm:$0xff] }
 0x3f5   : > { %3909 = vmatprep.subr.bf16.mxu1 %v4533_v31  ;;  %v3883_v62 = vpack.c.bf16 %v1690_v61, %v1689_v60  ;;  %v1867_v60 = vld [vmem:[%s5811_s13 + $0x78] sm:$0xff] }
 0x3f6   : > { %3881 = vmatpush3.bf16.msra.mxu0 %v3880_v59  ;;  %v1866_v59 = vld [vmem:[%s5811_s13 + $0x70] sm:$0xff] }
 0x3f7   : > { %3882 = vmatprep.subr.bf16.mxu0 %v4533_v31  ;;  %v3940_v61 = vpack.c.bf16 %v1867_v60, %v1866_v59  ;;  %v3167_v59 = vld [vmem:[%s5805_s7 + $0x1b0] sm:$0xff]  ;;  %v3170_v60 = vld [vmem:[%s5805_s7 + $0x1c8] sm:$0xff] }
 0x3f8   : > { %3911 = vmatpush3.bf16.msra.mxu1 %v3910_v63  ;;  %v1692_v63 = vld [vmem:[#allocation9 + $0x58] sm:$0xff] }
 0x3f9   : > { %3912 = vmatprep.subr.bf16.mxu1 %v4533_v31  ;;  %v3886_v1 = vpack.c.bf16 %v1692_v63, %v1691_v24  ;;  %v3148_v24 = vld [vmem:[%s5805_s7 + $0x118] sm:$0xff] }
 0x3fa   : > { %3884 = vmatpush3.bf16.msra.mxu0 %v3883_v62  ;;  %v3146_v62 = vld [vmem:[%s5805_s7 + $0x108] sm:$0xff] }
 0x3fb   : > { %3885 = vmatprep.subr.bf16.mxu0 %v4533_v31  ;;  %v3966_v63 = vpack.c.bf16 %v3148_v24, %v3146_v62 }
 0x3fc   : > { %3914 = vmatpush3.bf16.msra.mxu1 %v3913_v3  ;;  %v1694_v3 = vld [vmem:[#allocation9 + $0x68] sm:$0xff] }
 0x3fd   : > { %3915 = vmatprep.subr.bf16.mxu1 %v4533_v31  ;;  %v3889_v5 = vpack.c.bf16 %v1694_v3, %v1693_v2  ;;  %v3123_v2 = vld [vmem:[%s5810_s12] ss:$0 sm:$0xff] }
 0x3fe   : > { %3887 = vmatpush3.bf16.msra.mxu0 %v3886_v1 }
 0x3ff   : > { %3888 = vmatprep.subr.bf16.mxu0 %v4533_v31 }
 0x400   : > { %3917 = vmatpush3.bf16.msra.mxu1 %v3916_v8  ;;  %v1696_v8 = vld [vmem:[#allocation9 + $0x78] sm:$0xff] }
 0x401   : > { %3942 = vmatprep.subr.bf16.mxu1 %v4533_v31  ;;  %v3892_v9 = vpack.c.bf16 %v1696_v8, %v1695_v7 }
 0x402   : > { %3890 = vmatpush3.bf16.msra.mxu0 %v3889_v5 }
 0x403   : > { %3480 = vmatmul.mubr.f32.vlgmr.msra.gmra.mrb[12].mxu1 %v1404_v15  ;;  %3891 = vmatprep.subr.bf16.mxu0 %v4533_v31 }
 0x404   : > { %3944 = vmatpush3.bf16.msra.mxu1 %v3943_v12  ;;  %3549 = vmatprep.mubr.msk.f32.mxu1 %vm4534_vm1, %v4530_v0 }
 0x405   : > { %3945 = vmatprep.subr.bf16.mxu1 %v4533_v31 }
 0x406   : > { %3893 = vmatpush3.bf16.msra.mxu0 %v3892_v9 }
 0x407   : > { %3918 = vmatprep.subr.bf16.mxu0 %v4533_v31 }
 0x408   : > { %3947 = vmatpush3.bf16.msra.mxu1 %v3946_v18 }
 0x409   : > { %3948 = vmatprep.subr.bf16.mxu1 %v4533_v31 }
 0x40c   : > { %3950 = vmatpush3.bf16.msra.mxu1 %v3949_v30 }
 0x40d   : > { %3951 = vmatprep.subr.bf16.mxu1 %v4533_v31 }
 0x410   : > { %3953 = vmatpush3.bf16.msra.mxu1 %v3952_v26 }
 0x411   : > { %3954 = vmatprep.subr.bf16.mxu1 %v4533_v31 }
 0x414   : > { %3956 = vmatpush3.bf16.msra.mxu1 %v3955_v38 }
 0x415   : > { %3957 = vmatprep.subr.bf16.mxu1 %v4533_v31 }
 0x418   : > { %3959 = vmatpush3.bf16.msra.mxu1 %v3958_v42 }
 0x419   : > { %3960 = vmatprep.subr.bf16.mxu1 %v4533_v31 }
 0x41c   : > { %3962 = vmatpush3.bf16.msra.mxu1 %v3961_v47  ;;  %v1853_v47 = vld [vmem:[%s5811_s13 + $0x8] sm:$0xff] }
 0x41d   : > { %3963 = vmatprep.subr.bf16.mxu1 %v4533_v31  ;;  %v3919_v13 = vpack.c.bf16 %v1853_v47, %v1852_v46  ;;  %v3153_v46 = vld [vmem:[%s5805_s7 + $0x140] sm:$0xff]  ;;  %v3155_v47 = vld [vmem:[%s5805_s7 + $0x150] sm:$0xff] }
 0x420   : > { %3965 = vmatpush3.bf16.msra.mxu1 %v3964_v49  ;;  %v3928_v49 = vpack.c.bf16 %v1859_v48, %v1858_v45  ;;  %v3164_v45 = vld [vmem:[%s5805_s7 + $0x198] sm:$0xff]  ;;  %v3980_v48 = vpack.c.bf16 %v3159_v39, %v3157_v36  ;;  %v3191_v36 = vld [vmem:[%s5807_s9 + $0x160] sm:$0xff]  ;;  %v3193_v39 = vld [vmem:[%s5807_s9 + $0x170] sm:$0xff] }
 0x423   : > { %3550 = vmatmul.mubr.f32.vlgmr.msra.gmra.mrb[14].mxu1 %v1986_v56  ;;  %v1864_v56 = vld [vmem:[%s5811_s13 + $0x60] sm:$0xff] }
 0x424   : > { %2313 = vmatprep.mubr.f32.mxu1 %v4530_v0  ;;  %v3937_v58 = vpack.c.bf16 %v1865_v57, %v1864_v56  ;;  %v3986_v57 = vpack.c.bf16 %v3168_v54, %v3166_v53  ;;  %v3202_v53 = vld [vmem:[%s5807_s9 + $0x1b8] sm:$0xff] }
 0x496   : > { %v1504_v10 = vpop.f32.mrb[8].mxu1  ;;  %v1576_v11 = vpop.f32.mrb[10].mxu0 }
 0x497   : > { %v1653_v12 = vmul.f32 %v1504_v10, %v1504_v10  ;;  %v1654_v15 = vmul.f32 %v1576_v11, %v1576_v11  ;;  %v5259_v16 = vpop.f32.mrb[9].mxu1  ;;  %v5261_v17 = vpop.f32.mrb[11].mxu0  ;;  %v3143_v11 = vld [vmem:[%s5804_s6 + $0x1] ss:$0 sm:$0xff] }
 0x499   : > { %v1655_v18 = vadd.f32 %v1654_v15, %v1653_v12  ;;  %v3145_v15 = vld [vmem:[%s5805_s7 + $0x100] sm:$0xff] }
 0x4b6   : > { %v1648_v19 = vpop.f32.mrb[10].mxu1 }
 0x4b7   : > { %v1656_v20 = vmul.f32 %v1648_v19, %v1648_v19  ;;  %v5263_v30 = vpop.f32.mrb[11].mxu1  ;;  %v3150_v19 = vld [vmem:[%s5805_s7 + $0x128] sm:$0xff] }
 0x4b9   : > { %v1657_v23 = vadd.f32 %v1656_v20, %v1655_v18  ;;  %v3147_v18 = vld [vmem:[%s5805_s7 + $0x110] sm:$0xff]  ;;  %v3152_v20 = vld [vmem:[%s5805_s7 + $0x138] sm:$0xff] }
 0x4bb   : > { %4280 = vrsqrt.f32 %v1657_v23  ;;  %vm1660_vm6 = vcmp.eq.f32.partialorder %v1657_v23, inf  ;;  %v1663_v27 = vand.u32 2147483648, %v1657_v23  ;;  %vm1662_vm7 = vcmp.eq.f32.partialorder %v1657_v23, 0.0 }
 0x4c5   : > { %v4281_v25 = vpop.eup %4280 }
 0x4c6   : > { %v1659_v26 = vmul.f32 %v4281_v25, %v1657_v23 }
 0x4c8   : > { %v1661_v29 = vsel %vm1660_vm6, %v1657_v23, %v1659_v26  ;;  %v3968_v26 = vpack.c.bf16 %v3147_v18, %v3145_v15  ;;  %v3180_v18 = vld [vmem:[%s5807_s9 + $0x108] sm:$0xff] }
 0x4c9   : > { %v1664_v38 = vsel %vm1662_vm7, %v1663_v27, %v1661_v29  ;;  %v3970_v29 = vpack.c.bf16 %v3152_v20, %v3150_v19  ;;  %v3182_v19 = vld [vmem:[%s5807_s9 + $0x118] sm:$0xff]  ;;  %v3179_v20 = vld [vmem:[%s5807_s9 + $0x100] sm:$0xff] }
 0x4ca   : > { %3445 = vmatmul.mubr.f32.vlgmr.msra.gmra.mrb[12].mxu0 %v1664_v38  ;;  %v3149_v38 = vld [vmem:[%s5805_s7 + $0x120] sm:$0xff] }
 0x4cb   : > { %3514 = vmatprep.mubr.msk.f32.mxu0 %vm4534_vm1, %v4530_v0  ;;  %3920 = vmatpush3.bf16.msra.mxu0 %v3919_v13  ;;  %v3158_v13 = vld [vmem:[%s5805_s7 + $0x168] sm:$0xff] }
 0x4cc   : > { %3921 = vmatprep.subr.bf16.mxu0 %v4533_v31 }
 0x4d6   : > { %v1833_v40 = vpop.f32.mrb[12].mxu1 }
 0x4d7   : > { %v3481_v41 = vpop.f32.mrb[13].mxu1 }
 0x4d8   : > { %v3154_v41 = vld [vmem:[%s5805_s7 + $0x148] sm:$0xff] }
 0x4f6   : > { %v2070_v42 = vpop.f32.mrb[14].mxu1 }
 0x4f7   : > { %v2074_v44 = vadd.f32 %v2070_v42, %v4888_v32  ;;  %v3551_v28 = vpop.f32.mrb[15].mxu1  ;;  %v1855_v32 = vld [vmem:[%s5811_s13 + $0x18] sm:$0xff] }
 0x4f8   : > { %v3922_v35 = vpack.c.bf16 %v1855_v32, %v1854_v21  ;;  %v3156_v42 = vld [vmem:[%s5805_s7 + $0x158] sm:$0xff]  ;;  %v3976_v32 = vpack.c.bf16 %v3155_v47, %v3153_v46  ;;  %v3187_v46 = vld [vmem:[%s5807_s9 + $0x140] sm:$0xff]  ;;  %v3189_v47 = vld [vmem:[%s5807_s9 + $0x150] sm:$0xff] }
 0x4f9   : > { %v5335_v12 = vadd.f32 %v3143_v11, %v2074_v44  ;;  %v3974_v28 = vpack.c.bf16 %v3156_v42, %v3154_v41  ;;  %v3160_v21 = vld [vmem:[%s5805_s7 + $0x178] sm:$0xff]  ;;  %v3188_v41 = vld [vmem:[%s5807_s9 + $0x148] sm:$0xff] }
 0x4fa   : > { %3923 = vmatpush3.bf16.msra.mxu0 %v3922_v35  ;;  %v3978_v35 = vpack.c.bf16 %v3160_v21, %v3158_v13  ;;  %v3190_v42 = vld [vmem:[%s5807_s9 + $0x158] sm:$0xff]  ;;  %v3192_v13 = vld [vmem:[%s5807_s9 + $0x168] sm:$0xff] }
 0x4fb   : > { %3924 = vmatprep.subr.bf16.mxu0 %v4533_v31  ;;  %v3144_v23 = vmul.f32 -1.442695, %v5335_v12  ;;  %v3194_v21 = vld [vmem:[%s5807_s9 + $0x178] sm:$0xff] }
 0x4fe   : > { %3926 = vmatpush3.bf16.msra.mxu0 %v3925_v43  ;;  %v3162_v43 = vld [vmem:[%s5805_s7 + $0x188] sm:$0xff] }
 0x4ff   : > { %3927 = vmatprep.subr.bf16.mxu0 %v4533_v31  ;;  %v3982_v50 = vpack.c.bf16 %v3164_v45, %v3162_v43  ;;  %v3196_v43 = vld [vmem:[%s5807_s9 + $0x188] sm:$0xff]  ;;  %v3198_v45 = vld [vmem:[%s5807_s9 + $0x198] sm:$0xff] }
 0x502   : > { %3929 = vmatpush3.bf16.msra.mxu0 %v3928_v49 }
 0x503   : > { %3930 = vmatprep.subr.bf16.mxu0 %v4533_v31 }
 0x506   : > { %3932 = vmatpush3.bf16.msra.mxu0 %v3931_v52  ;;  %v3163_v52 = vld [vmem:[%s5805_s7 + $0x190] sm:$0xff] }
 0x507   : > { %3933 = vmatprep.subr.bf16.mxu0 %v4533_v31  ;;  %v3984_v56 = vpack.c.bf16 %v3163_v52, %v3161_v51  ;;  %v3197_v51 = vld [vmem:[%s5807_s9 + $0x190] sm:$0xff]  ;;  %v3200_v52 = vld [vmem:[%s5807_s9 + $0x1a8] sm:$0xff] }
 0x50a   : > { %3935 = vmatpush3.bf16.msra.mxu0 %v3934_v55 }
 0x50b   : > { %3936 = vmatprep.subr.bf16.mxu0 %v4533_v31 }
 0x50e   : > { %3938 = vmatpush3.bf16.msra.mxu0 %v3937_v58  ;;  %v3165_v58 = vld [vmem:[%s5805_s7 + $0x1a0] sm:$0xff] }
 0x50f   : > { %3939 = vmatprep.subr.bf16.mxu0 %v4533_v31  ;;  %v3988_v62 = vpack.c.bf16 %v3167_v59, %v3165_v58  ;;  %v3204_v58 = vld [vmem:[%s5807_s9 + $0x1c8] sm:$0xff]  ;;  %v3206_v59 = vld [vmem:[%s5807_s9 + $0x1d8] sm:$0xff] }
 0x512   : > { %3941 = vmatpush3.bf16.msra.mxu0 %v3940_v61  ;;  %v3172_v61 = vld [vmem:[%s5805_s7 + $0x1d8] sm:$0xff] }
 0x513   : > { %3967 = vmatprep.subr.bf16.mxu0 %v3966_v63  ;;  %v3990_v24 = vpack.c.bf16 %v3172_v61, %v3170_v60  ;;  %v3169_v63 = vld [vmem:[%s5805_s7 + $0x1c0] sm:$0xff]  ;;  %v4022_v61 = vpack.c.bf16 %v3206_v59, %v3204_v58  ;;  %v2496_v58 = vld [vmem:[#allocation9 + $0x90] sm:$0xff] }
 0x59d   : > { %v1763_v1 = vpop.f32.mrb[12].mxu0 }
 0x59e   : > { %v1834_v3 = vadd.f32 %v1833_v40, %v1763_v1  ;;  %v3446_v5 = vpop.f32.mrb[13].mxu0  ;;  %v3151_v40 = vld [vmem:[%s5805_s7 + $0x130] sm:$0xff] }
 0x59f   : > { %v3972_v44 = vpack.c.bf16 %v3151_v40, %v3149_v38  ;;  %v3171_v1 = vld [vmem:[%s5805_s7 + $0x1d0] sm:$0xff]  ;;  %v3183_v38 = vld [vmem:[%s5807_s9 + $0x120] sm:$0xff] }
 0x5a0   : > { %v1844_v7 = vadd.f32 %v3123_v2, %v1834_v3  ;;  %v3174_v2 = vld [vmem:[%s5805_s7 + $0x1e8] sm:$0xff]  ;;  %v3176_v3 = vld [vmem:[%s5805_s7 + $0x1f8] sm:$0xff]  ;;  %v3992_v5 = vpack.c.bf16 %v3171_v1, %v3169_v63  ;;  %v3185_v40 = vld [vmem:[%s5807_s9 + $0x130] sm:$0xff] }
 0x5a1   : > { %v3208_v1 = vld [vmem:[%s5807_s9 + $0x1e8] sm:$0xff] }
 0x5a2   : > { %v3124_v8 = vmul.f32 -1.442695, %v1844_v7 }
 0x5a4   : > { %4282 = vpow2.f32 %v3124_v8  ;;  %v3173_v8 = vld [vmem:[%s5805_s7 + $0x1e0] sm:$0xff] }
 0x5ae   : > { %v4283_v9 = vpop.eup %4282 }
 0x5af   : > { %v1848_v10 = vadd.f32 1.0, %v4283_v9  ;;  %v3175_v9 = vld [vmem:[%s5805_s7 + $0x1f0] sm:$0xff] }
 0x5b1   : > { %4284 = vrcp.f32 %v1848_v10  ;;  %v3996_v10 = vpack.c.bf16 %v3175_v9, %v3173_v8  ;;  %v3125_v9 = vld [vmem:[%s5812_s14] ss:$0 sm:$0xff] }
 0x5b2   : > { %4286 = vpow2.f32 %v3144_v23  ;;  %v5440_v23 = vpack.c.bf16 %v3182_v19, %v3180_v18  ;;  %v3177_v18 = vld [vmem:[%s5806_s8 + $0x2] sm:$0x3] }
 0x5b3   : > { %v2134_v19 = vrot.slane %v3177_v18, %v1323_v37  ;;  %v2478_v37 = vld [vmem:[#allocation8 + $0x88] sm:$0xff] }
 0x5b4   : > { %3999 = vmatprep.subr.bf16.mxu1 %v5440_v23 }
 0x5bb   : > { %v4285_v25 = vpop.eup %4284 }
 0x5bc   : > { %v1851_v27 = vmul.f32 %v4285_v25, %v1844_v7  ;;  %v4287_v49 = vpop.eup %4286  ;;  %v3994_v7 = vpack.c.bf16 %v3176_v3, %v3174_v2  ;;  %v3184_v25 = vld [vmem:[%s5807_s9 + $0x128] sm:$0xff]  ;;  %v3210_v2 = vld [vmem:[%s5807_s9 + $0x1f8] sm:$0xff] }
 0x5bd   : > { %v2087_v55 = vadd.f32 1.0, %v4287_v49  ;;  %v5515_v49 = vpack.c.bf16 %v3198_v45, %v3196_v43  ;;  %v4026_v3 = vpack.c.bf16 %v3210_v2, %v3208_v1  ;;  %v2488_v43 = vld [vmem:[#allocation8 + $0xd8] sm:$0xff]  ;;  %v2500_v1 = vld [vmem:[#allocation9 + $0xb0] sm:$0xff] }
 0x5be   : > { %3515 = vmatmul.mubr.f32.vlgmr.msra.gmra.mrb[14].mxu0 %v1851_v27  ;;  %v2501_v2 = vld [vmem:[#allocation9 + $0xb8] sm:$0xff] }
 0x5bf   : > { %3969 = vmatpush1.bf16.msra.mxu0 %v3968_v26  ;;  %2201 = vmatprep.mubr.f32.mxu0 %v4530_v0  ;;  %4288 = vrcp.f32 %v2087_v55  ;;  %v3186_v26 = vld [vmem:[%s5807_s9 + $0x138] sm:$0xff]  ;;  %v4018_v55 = vpack.c.bf16 %v3202_v53, %v3200_v52  ;;  %v2492_v52 = vld [vmem:[#allocation8 + $0xf8] sm:$0xff] }
 0x5c0   : > { %3971 = vmatprep.subr.bf16.mxu0 %v3970_v29  ;;  %v5453_v29 = vpack.c.bf16 %v3186_v26, %v3184_v25 }
 0x5c3   : > { %3973 = vmatpush1.bf16.msra.mxu0 %v3972_v44  ;;  %v5471_v44 = vpack.c.bf16 %v3185_v40, %v3183_v38  ;;  %v2479_v40 = vld [vmem:[#allocation8 + $0x90] sm:$0xff] }
 0x5c4   : > { %3975 = vmatprep.subr.bf16.mxu0 %v3974_v28  ;;  %v5475_v28 = vpack.c.bf16 %v3190_v42, %v3188_v41  ;;  %v2480_v41 = vld [vmem:[#allocation8 + $0x98] sm:$0xff] }
 0x5c5   : > { %v4122_v42 = vpack.c.bf16 %v2480_v41, %v2479_v40 }
 0x5c7   : > { %3977 = vmatpush1.bf16.msra.mxu0 %v3976_v32  ;;  %v5491_v32 = vpack.c.bf16 %v3189_v47, %v3187_v46  ;;  %v2484_v46 = vld [vmem:[#allocation8 + $0xb8] sm:$0xff] }
 0x5c8   : > { %3979 = vmatprep.subr.bf16.mxu0 %v3978_v35  ;;  %v5495_v35 = vpack.c.bf16 %v3194_v21, %v3192_v13  ;;  %v2485_v21 = vld [vmem:[#allocation8 + $0xc0] sm:$0xff] }
 0x5c9   : > { %v4289_v11 = vpop.eup %4288 }
 0x5ca   : > { %v2090_v15 = vmul.f32 %v4289_v11, %v5335_v12  ;;  %v3181_v12 = vld [vmem:[%s5807_s9 + $0x110] sm:$0xff] }
 0x5cb   : > { %3981 = vmatpush1.bf16.msra.mxu0 %v3980_v48  ;;  %v5451_v27 = vpack.c.bf16 %v3181_v12, %v3179_v20  ;;  %v5511_v48 = vpack.c.bf16 %v3193_v39, %v3191_v36  ;;  %v2487_v39 = vld [vmem:[#allocation8 + $0xd0] sm:$0xff] }
 0x5cc   : > { %3983 = vmatprep.subr.bf16.mxu0 %v3982_v50  ;;  %v3195_v50 = vld [vmem:[%s5807_s9 + $0x180] sm:$0xff]  ;;  %v4134_v45 = vpack.c.bf16 %v2488_v43, %v2487_v39  ;;  %v3217_v39 = vld [vmem:[%s5811_s13 + $0x98] sm:$0xff] }
 0x5cd   : > { %4001 = vmatpush1.bf16.msra.mxu1 %v5451_v27  ;;  %v4016_v54 = vpack.c.bf16 %v3197_v51, %v3195_v50  ;;  %v2491_v51 = vld [vmem:[#allocation8 + $0xf0] sm:$0xff] }
 0x5ce   : > { %4003 = vmatprep.subr.bf16.mxu1 %v5453_v29  ;;  %v4140_v53 = vpack.c.bf16 %v2492_v52, %v2491_v51  ;;  %v3221_v51 = vld [vmem:[%s5811_s13 + $0xb8] sm:$0xff] }
 0x5cf   : > { %3985 = vmatpush1.bf16.msra.mxu0 %v3984_v56  ;;  %v3199_v56 = vld [vmem:[%s5807_s9 + $0x1a0] sm:$0xff] }
 0x5d0   : > { %3987 = vmatprep.subr.bf16.mxu0 %v3986_v57  ;;  %v3201_v57 = vld [vmem:[%s5807_s9 + $0x1b0] sm:$0xff] }
 0x5d1   : > { %4005 = vmatpush1.bf16.msra.mxu1 %v5471_v44  ;;  %v4020_v60 = vpack.c.bf16 %v3201_v57, %v3199_v56  ;;  %v2494_v56 = vld [vmem:[#allocation9 + $0x80] sm:$0xff]  ;;  %v2495_v57 = vld [vmem:[#allocation9 + $0x88] sm:$0xff] }
 0x5d2   : > { %4007 = vmatprep.subr.bf16.mxu1 %v5475_v28  ;;  %v4095_v59 = vpack.c.bf16 %v2495_v57, %v2494_v56  ;;  %v3224_v56 = vld [vmem:[%s5811_s13 + $0xd0] sm:$0xff]  ;;  %v3225_v57 = vld [vmem:[%s5811_s13 + $0xd8] sm:$0xff] }
 0x5d3   : > { %3989 = vmatpush1.bf16.msra.mxu0 %v3988_v62  ;;  %v3203_v62 = vld [vmem:[%s5807_s9 + $0x1c0] sm:$0xff] }
 0x5d4   : > { %3991 = vmatprep.subr.bf16.mxu0 %v3990_v24  ;;  %v3205_v24 = vld [vmem:[%s5807_s9 + $0x1d0] sm:$0xff] }
 0x5d5   : > { %4009 = vmatpush1.bf16.msra.mxu1 %v5491_v32  ;;  %v4024_v63 = vpack.c.bf16 %v3205_v24, %v3203_v62  ;;  %v2498_v62 = vld [vmem:[#allocation9 + $0xa0] sm:$0xff]  ;;  %v2499_v24 = vld [vmem:[#allocation9 + $0xa8] sm:$0xff] }
 0x5d6   : > { %4011 = vmatprep.subr.bf16.mxu1 %v5495_v35 }
 0x5d7   : > { %3993 = vmatpush1.bf16.msra.mxu0 %v3992_v5  ;;  %v3207_v5 = vld [vmem:[%s5807_s9 + $0x1e0] sm:$0xff] }
 0x5d8   : > { %3995 = vmatprep.subr.bf16.mxu0 %v3994_v7  ;;  %v3209_v7 = vld [vmem:[%s5807_s9 + $0x1f0] sm:$0xff] }
 0x5d9   : > { %4013 = vmatpush1.bf16.msra.mxu1 %v5511_v48  ;;  %v4028_v8 = vpack.c.bf16 %v3209_v7, %v3207_v5  ;;  %v2502_v5 = vld [vmem:[#allocation9 + $0xc0] sm:$0xff]  ;;  %v2503_v7 = vld [vmem:[#allocation9 + $0xc8] sm:$0xff] }
 0x5da   : > { %4015 = vmatprep.subr.bf16.mxu1 %v5515_v49 }
 0x5db   : > { %3997 = vmatpush1.bf16.msra.mxu0 %v3996_v10 }
 0x5dc   : > { %4031 = vmatprep.subr.bf16.mxu0 %v5440_v23 }
 0x5dd   : > { %4017 = vmatpush1.bf16.msra.mxu1 %v4016_v54 }
 0x5de   : > { %2202 = vmatmul.mubr.f32.vlgmr.msra.gmra.mrb[16].mxu0 %v2090_v15  ;;  %4019 = vmatprep.subr.bf16.mxu1 %v4018_v55 }
 0x5df   : > { %2385 = vmatprep.mubr.f32.mxu0 %v4530_v0  ;;  %4033 = vmatpush1.bf16.msra.mxu0 %v5451_v27 }
 0x5e0   : > { %4035 = vmatprep.subr.bf16.mxu0 %v5453_v29 }
 0x5e1   : > { %4021 = vmatpush1.bf16.msra.mxu1 %v4020_v60 }
 0x5e2   : > { %4023 = vmatprep.subr.bf16.mxu1 %v4022_v61 }
 0x5e3   : > { %4037 = vmatpush1.bf16.msra.mxu0 %v5471_v44 }
 0x5e4   : > { %4039 = vmatprep.subr.bf16.mxu0 %v5475_v28 }
 0x5e5   : > { %4025 = vmatpush1.bf16.msra.mxu1 %v4024_v63 }
 0x5e6   : > { %4027 = vmatprep.subr.bf16.mxu1 %v4026_v3 }
 0x5e7   : > { %4041 = vmatpush1.bf16.msra.mxu0 %v5491_v32 }
 0x5e8   : > { %4043 = vmatprep.subr.bf16.mxu0 %v5495_v35 }
 0x5e9   : > { %4029 = vmatpush1.bf16.msra.mxu1 %v4028_v8 }
 0x5ea   : > { %4063 = vmatprep.subr.bf16.mxu1 %v5440_v23 }
 0x5eb   : > { %4045 = vmatpush1.bf16.msra.mxu0 %v5511_v48 }
 0x5ec   : > { %4047 = vmatprep.subr.bf16.mxu0 %v5515_v49 }
 0x5ef   : > { %4049 = vmatpush1.bf16.msra.mxu0 %v4016_v54 }
 0x5f0   : > { %4051 = vmatprep.subr.bf16.mxu0 %v4018_v55 }
 0x5f3   : > { %4053 = vmatpush1.bf16.msra.mxu0 %v4020_v60 }
 0x5f4   : > { %4055 = vmatprep.subr.bf16.mxu0 %v4022_v61 }
 0x5f7   : > { %4057 = vmatpush1.bf16.msra.mxu0 %v4024_v63 }
 0x5f8   : > { %4059 = vmatprep.subr.bf16.mxu0 %v4026_v3 }
 0x5fb   : > { %4061 = vmatpush1.bf16.msra.mxu0 %v4028_v8 }
 0x5fc   : > { %4094 = vmatprep.subr.bf16.mxu0 %v4533_v31 }
 0x691   : > { %v1941_v10 = vpop.f32.mrb[14].mxu0 }
 0x692   : > { %v5568_v11 = vadd.f32 %v3125_v9, %v1941_v10  ;;  %v3516_v15 = vpop.f32.mrb[15].mxu0  ;;  %v2504_v9 = vld [vmem:[#allocation9 + $0xd0] sm:$0xff]  ;;  %v2505_v10 = vld [vmem:[#allocation9 + $0xd8] sm:$0xff] }
 0x693   : > { %v4110_v15 = vpack.c.bf16 %v2505_v10, %v2504_v9 }
 0x694   : > { %1946 = vst.msk [vmem:[#allocation2] sm:$0xff] %vm1945_vm8, %v5568_v11 }
 0x6b1   : > { %v2203_v20 = vpop.f32.mrb[16].mxu0 }
 0x6b2   : > { %v2205_v23 = vpop.f32.mrb[17].mxu0 }
 0x6b3   : > { %v2206_v12 = vadd.f32 %v2205_v23, %v2134_v19  ;;  %v2507_v19 = vld [vmem:[#allocation9 + $0xe8] sm:$0xff]  ;;  %v2508_v23 = vld [vmem:[#allocation9 + $0xf0] sm:$0xff] }
 0x6b5   : > { %v2248_v25 = vmul.f32 %v2206_v12, %v4871_v6  ;;  %v2320_v26 = vmul.f32 %v2206_v12, %v4877_v14  ;;  %v2392_v38 = vmul.f32 %v2206_v12, %v4881_v22  ;;  %v2130_v6 = vrot.slane %v3177_v18, %v1319_v4  ;;  %v2477_v22 = vld [vmem:[#allocation8 + $0x80] sm:$0xff]  ;;  %v2482_v4 = vld [vmem:[#allocation8 + $0xa8] sm:$0xff]  ;;  %v2509_v12 = vld [vmem:[#allocation9 + $0xf8] sm:$0xff] }
 0x6b6   : > { %v2506_v18 = vld [vmem:[#allocation9 + $0xe0] sm:$0xff] }
 0x6b7   : > { %2314 = vmatmul.mubr.f32.vlgmr.msra.gmra.mrb[16].mxu1 %v2248_v25  ;;  %2386 = vmatmul.mubr.f32.vlgmr.msra.gmra.mrb[18].mxu0 %v2320_v26  ;;  %v2204_v14 = vadd.f32 %v2203_v20, %v2130_v6  ;;  %v4113_v20 = vpack.c.bf16 %v2507_v19, %v2506_v18  ;;  %v4116_v25 = vpack.c.bf16 %v2509_v12, %v2508_v23 }
 0x6b8   : > { %4065 = vmatpush1.bf16.msra.mxu1 %v5451_v27  ;;  %2457 = vmatprep.mubr.f32.mxu1 %v4530_v0 }
 0x6b9   : > { %4067 = vmatprep.subr.bf16.mxu1 %v5453_v29  ;;  %3584 = vmatprep.mubr.msk.f32.mxu0 %vm4534_vm1, %v4530_v0  ;;  %v3178_v27 = vmul.f32 -1.442695, %v2204_v14  ;;  %v4119_v29 = vpack.c.bf16 %v2478_v37, %v2477_v22 }
 0x6ba   : > { %4096 = vmatpush3.bf16.msra.mxu0 %v4095_v59  ;;  %v3226_v59 = vld [vmem:[%s5811_s13 + $0xe0] sm:$0xff] }
 0x6bb   : > { %4290 = vpow2.f32 %v3178_v27  ;;  %4097 = vmatprep.subr.bf16.mxu0 %v4533_v31 }
 0x6bc   : > { %4069 = vmatpush1.bf16.msra.mxu1 %v5471_v44  ;;  %v4125_v44 = vpack.c.bf16 %v2482_v4, %v2481_v34 }
 0x6bd   : > { %4071 = vmatprep.subr.bf16.mxu1 %v5475_v28  ;;  %v2483_v28 = vld [vmem:[#allocation8 + $0xb0] sm:$0xff] }
 0x6be   : > { %v4128_v47 = vpack.c.bf16 %v2484_v46, %v2483_v28 }
 0x6c0   : > { %4073 = vmatpush1.bf16.msra.mxu1 %v5491_v32  ;;  %v2486_v32 = vld [vmem:[#allocation8 + $0xc8] sm:$0xff] }
 0x6c1   : > { %4075 = vmatprep.subr.bf16.mxu1 %v5495_v35  ;;  %v4131_v36 = vpack.c.bf16 %v2486_v32, %v2485_v21  ;;  %v3214_v21 = vld [vmem:[%s5811_s13 + $0x80] sm:$0xff]  ;;  %v3215_v32 = vld [vmem:[%s5811_s13 + $0x88] sm:$0xff] }
 0x6c4   : > { %4077 = vmatpush1.bf16.msra.mxu1 %v5511_v48  ;;  %v2489_v48 = vld [vmem:[#allocation8 + $0xe0] sm:$0xff] }
 0x6c5   : > { %4079 = vmatprep.subr.bf16.mxu1 %v5515_v49  ;;  %v4291_v13 = vpop.eup %4290  ;;  %v2490_v49 = vld [vmem:[#allocation8 + $0xe8] sm:$0xff] }
 0x6c6   : > { %v2211_v35 = vadd.f32 1.0, %v4291_v13  ;;  %v4137_v50 = vpack.c.bf16 %v2490_v49, %v2489_v48  ;;  %v3219_v48 = vld [vmem:[%s5811_s13 + $0xa8] sm:$0xff] }
 0x6c8   : > { %4081 = vmatpush1.bf16.msra.mxu1 %v4016_v54  ;;  %4292 = vrcp.f32 %v2211_v35  ;;  %v4143_v35 = vpack.c.bf16 %v3215_v32, %v3214_v21 }
 0x6c9   : > { %4083 = vmatprep.subr.bf16.mxu1 %v4018_v55 }
 0x6cc   : > { %4085 = vmatpush1.bf16.msra.mxu1 %v4020_v60  ;;  %v2497_v60 = vld [vmem:[#allocation9 + $0x98] sm:$0xff] }
 0x6cd   : > { %4087 = vmatprep.subr.bf16.mxu1 %v4022_v61  ;;  %v4098_v61 = vpack.c.bf16 %v2497_v60, %v2496_v58  ;;  %v4158_v58 = vpack.c.bf16 %v3225_v57, %v3224_v56  ;;  %v3227_v60 = vld [vmem:[%s5811_s13 + $0xe8] sm:$0xff] }
 0x6cf   : > { %4099 = vmatpush3.bf16.msra.mxu0 %v4098_v61  ;;  %v4161_v61 = vpack.c.bf16 %v3227_v60, %v3226_v59 }
 0x6d0   : > { %4089 = vmatpush1.bf16.msra.mxu1 %v4024_v63  ;;  %v4101_v63 = vpack.c.bf16 %v2499_v24, %v2498_v62  ;;  %4100 = vmatprep.subr.bf16.mxu0 %v4533_v31  ;;  %v3228_v62 = vld [vmem:[%s5811_s13 + $0xf0] sm:$0xff]  ;;  %v3229_v24 = vld [vmem:[%s5811_s13 + $0xf8] sm:$0xff] }
 0x6d1   : > { %4091 = vmatprep.subr.bf16.mxu1 %v4026_v3  ;;  %v4104_v3 = vpack.c.bf16 %v2501_v2, %v2500_v1  ;;  %v4535_v1 = vmov 0   ;;  %v1159_v2 = vld [vmem:[%s620_s17] sm:$0xff] }
 0x6d2   : > { %v4293_v54 = vpop.eup %4292  ;;  %4266 = vset.pattern.permute.xlu1 %v4535_v1 }
 0x6d3   : > { %v2214_v55 = vmul.f32 %v4293_v54, %v2204_v14  ;;  %4102 = vmatpush3.bf16.msra.mxu0 %v4101_v63  ;;  %v3223_v54 = vld [vmem:[%s5811_s13 + $0xc8] sm:$0xff]  ;;  %v4164_v63 = vpack.c.bf16 %v3229_v24, %v3228_v62  ;;  %1163 = vperm.xlu1 %4266, %v1159_v2  }
 0x6d4   : > { %4093 = vmatpush1.bf16.msra.mxu1 %v4028_v8  ;;  %4103 = vmatprep.subr.bf16.mxu0 %v4533_v31  ;;  %v4107_v8 = vpack.c.bf16 %v2503_v7, %v2502_v5 }
 0x6d5   : > { %4118 = vmatprep.subr.bf16.mxu1 %v4533_v31 }
 0x6d7   : > { %2458 = vmatmul.mubr.f32.vlgmr.msra.gmra.mrb[18].mxu1 %v2392_v38  ;;  %4105 = vmatpush3.bf16.msra.mxu0 %v4104_v3 }
 0x6d8   : > { %4120 = vmatpush3.bf16.msra.mxu1 %v4119_v29  ;;  %3619 = vmatprep.mubr.msk.f32.mxu1 %vm4534_vm1, %v4530_v0 }
 0x6d9   : > { %4121 = vmatprep.subr.bf16.mxu1 %v4533_v31  ;;  %4106 = vmatprep.subr.bf16.mxu0 %v4533_v31 }
 0x6db   : > { %4108 = vmatpush3.bf16.msra.mxu0 %v4107_v8 }
 0x6dc   : > { %4123 = vmatpush3.bf16.msra.mxu1 %v4122_v42  ;;  %4109 = vmatprep.subr.bf16.mxu0 %v4533_v31 }
 0x6dd   : > { %4124 = vmatprep.subr.bf16.mxu1 %v4533_v31 }
 0x6df   : > { %4111 = vmatpush3.bf16.msra.mxu0 %v4110_v15 }
 0x6e0   : > { %4126 = vmatpush3.bf16.msra.mxu1 %v4125_v44  ;;  %4112 = vmatprep.subr.bf16.mxu0 %v4533_v31 }
 0x6e1   : > { %4127 = vmatprep.subr.bf16.mxu1 %v4533_v31 }
 0x6e3   : > { %4114 = vmatpush3.bf16.msra.mxu0 %v4113_v20  ;;  %v1161_v20 = vand.u32 127, %v1160_v33 }
 0x6e4   : > { %4129 = vmatpush3.bf16.msra.mxu1 %v4128_v47  ;;  %4115 = vmatprep.subr.bf16.mxu0 %v4533_v31 }
 0x6e5   : > { %4130 = vmatprep.subr.bf16.mxu1 %v4533_v31 }
 0x6e7   : > { %4117 = vmatpush3.bf16.msra.mxu0 %v4116_v25  ;;  %v3231_v25 = vld [vmem:[%s5812_s14 + $0x1] ss:$0 sm:$0xff] }
 0x6e8   : > { %4132 = vmatpush3.bf16.msra.mxu1 %v4131_v36  ;;  %4142 = vmatprep.subr.bf16.mxu0 %v4533_v31  ;;  %v3216_v36 = vld [vmem:[%s5811_s13 + $0x90] sm:$0xff] }
 0x6e9   : > { %4133 = vmatprep.subr.bf16.mxu1 %v4533_v31  ;;  %v4146_v43 = vpack.c.bf16 %v3217_v39, %v3216_v36 }
 0x6ec   : > { %4135 = vmatpush3.bf16.msra.mxu1 %v4134_v45  ;;  %v3218_v45 = vld [vmem:[%s5811_s13 + $0xa0] sm:$0xff] }
 0x6ed   : > { %4136 = vmatprep.subr.bf16.mxu1 %v4533_v31  ;;  %v4149_v49 = vpack.c.bf16 %v3219_v48, %v3218_v45 }
 0x6f0   : > { %4138 = vmatpush3.bf16.msra.mxu1 %v4137_v50  ;;  %v3220_v50 = vld [vmem:[%s5811_s13 + $0xb0] sm:$0xff] }
 0x6f1   : > { %4139 = vmatprep.subr.bf16.mxu1 %v4533_v31  ;;  %v4152_v52 = vpack.c.bf16 %v3221_v51, %v3220_v50 }
 0x6f4   : > { %4141 = vmatpush3.bf16.msra.mxu1 %v4140_v53  ;;  %v3222_v53 = vld [vmem:[%s5811_s13 + $0xc0] sm:$0xff] }
 0x6f5   : > { %3657 = vmatprep.subr.mxu1 %v4530_v0 }
 0x6f7   : > { %3620 = vmatmul.mubr.f32.vlgmr.msra.gmra.mrb[20].mxu1 %v2214_v55  ;;  %v4155_v55 = vpack.c.bf16 %v3223_v54, %v3222_v53 }
 0x6f8   : > { %3659 = vmatprep.mubr.msk.f32.mxu1 %vm4534_vm1, %v4530_v0 }
 0x752   : > { %v1164_v23 = vpop.permute.xlu1 %1163 }
 0x753   : > { %vm1165_vm11 = vcmp.eq.s32.totalorder %v1164_v23, %v1161_v20 }
 0x754   : > { %v3119_v12 = vsel %vm1165_vm11, 1.0, %v4530_v0 }
 0x755   : > { %2799 = vxpose.xlu0.b32.start.end [1/1] (short) (narrow) %v3119_v12, 8 }
 0x77e   : > { %4267 = vset.pattern.permute.xlu0 %v4535_v1 }
 0x78a   : > { %v2315_v26 = vpop.f32.mrb[16].mxu1  ;;  %v2387_v38 = vpop.f32.mrb[18].mxu0 }
 0x78b   : > { %v2464_v6 = vmul.f32 %v2315_v26, %v2315_v26  ;;  %v2465_v14 = vmul.f32 %v2387_v38, %v2387_v38  ;;  %v5614_v22 = vpop.f32.mrb[17].mxu1  ;;  %v5616_v37 = vpop.f32.mrb[19].mxu0 }
 0x78d   : > { %v2466_v27 = vadd.f32 %v2465_v14, %v2464_v6 }
 0x7aa   : > { %v2459_v29 = vpop.f32.mrb[18].mxu1 }
 0x7ab   : > { %v2467_v40 = vmul.f32 %v2459_v29, %v2459_v29  ;;  %v5618_v41 = vpop.f32.mrb[19].mxu1 }
 0x7ad   : > { %v2468_v42 = vadd.f32 %v2467_v40, %v2466_v27 }
 0x7af   : > { %4294 = vrsqrt.f32 %v2468_v42  ;;  %vm2471_vm9 = vcmp.eq.f32.partialorder %v2468_v42, inf  ;;  %v2474_v44 = vand.u32 2147483648, %v2468_v42  ;;  %vm2473_vm10 = vcmp.eq.f32.partialorder %v2468_v42, 0.0 }
 0x7b9   : > { %v4295_v34 = vpop.eup %4294 }
 0x7ba   : > { %v2470_v4 = vmul.f32 %v4295_v34, %v2468_v42 }
 0x7bc   : > { %v2472_v28 = vsel %vm2471_vm9, %v2468_v42, %v2470_v4 }
 0x7bd   : > { %v2475_v46 = vsel %vm2473_vm10, %v2474_v44, %v2472_v28 }
 0x7be   : > { %3585 = vmatmul.mubr.f32.vlgmr.msra.gmra.mrb[20].mxu0 %v2475_v46 }
 0x7bf   : > { %3654 = vmatprep.mubr.msk.f32.mxu0 %vm4534_vm1, %v4530_v0  ;;  %4144 = vmatpush3.bf16.msra.mxu0 %v4143_v35 }
 0x7c0   : > { %4145 = vmatprep.subr.bf16.mxu0 %v4533_v31 }
 0x7c3   : > { %4147 = vmatpush3.bf16.msra.mxu0 %v4146_v43 }
 0x7c4   : > { %4148 = vmatprep.subr.bf16.mxu0 %v4533_v31 }
 0x7c7   : > { %4150 = vmatpush3.bf16.msra.mxu0 %v4149_v49 }
 0x7c8   : > { %4151 = vmatprep.subr.bf16.mxu0 %v4533_v31 }
 0x7ca   : > { %v2646_v47 = vpop.f32.mrb[20].mxu1 }
 0x7cb   : > { %v3621_v13 = vpop.f32.mrb[21].mxu1  ;;  %4153 = vmatpush3.bf16.msra.mxu0 %v4152_v52 }
 0x7cc   : > { %4154 = vmatprep.subr.bf16.mxu0 %v4533_v31 }
 0x7cf   : > { %4156 = vmatpush3.bf16.msra.mxu0 %v4155_v55 }
 0x7d0   : > { %4157 = vmatprep.subr.bf16.mxu0 %v4533_v31 }
 0x7d3   : > { %4159 = vmatpush3.bf16.msra.mxu0 %v4158_v58 }
 0x7d4   : > { %4160 = vmatprep.subr.bf16.mxu0 %v4533_v31 }
 0x7d7   : > { %4162 = vmatpush3.bf16.msra.mxu0 %v4161_v61 }
 0x7d8   : > { %4163 = vmatprep.subr.bf16.mxu0 %v4533_v31  ;;  %v3212_v31 = vld [vmem:[%s5810_s12 + $0x1] ss:$0 sm:$0xff] }
 0x7db   : > { %4165 = vmatpush3.bf16.msra.mxu0 %v4164_v63 }
 0x891   : > { %v2576_v3 = vpop.f32.mrb[20].mxu0 }
 0x892   : > { %v2647_v5 = vadd.f32 %v2646_v47, %v2576_v3  ;;  %v3586_v7 = vpop.f32.mrb[21].mxu0 }
 0x894   : > { %v2658_v8 = vadd.f32 %v3212_v31, %v2647_v5 }
 0x896   : > { %v3213_v9 = vmul.f32 -1.442695, %v2658_v8 }
 0x898   : > { %4296 = vpow2.f32 %v3213_v9 }
 0x8a2   : > { %v4297_v10 = vpop.eup %4296 }
 0x8a3   : > { %v2662_v15 = vadd.f32 1.0, %v4297_v10 }
 0x8a5   : > { %4298 = vrcp.f32 %v2662_v15 }
 0x8af   : > { %v4299_v18 = vpop.eup %4298 }
 0x8b0   : > { %v2665_v19 = vmul.f32 %v4299_v18, %v2658_v8 }
 0x8b2   : > { %3655 = vmatmul.mubr.f32.vlgmr.msra.gmra.mrb[22].mxu0 %v2665_v19 }
 0x985   : > { %v2757_v26 = vpop.f32.mrb[22].mxu0 }
 0x986   : > { %v2758_v38 = vadd.f32 %v3231_v25, %v2757_v26  ;;  %v3656_v6 = vpop.f32.mrb[23].mxu0 }
 0x988   : > { %2762 = vrot.lane.b32.xlu1 %v2758_v38, %s4536_s30 }
 0x98c   : > { %2768 = vrot.lane.b32.xlu1 %v5614_v22, %s4536_s30 }
 0x990   : > { %2778 = vrot.lane.b32.xlu1 %v5618_v41, %s4536_s30 }
 0x994   : > { %1948 = vrot.lane.b32.xlu1 %v5259_v16, %s4536_s30  ;;  %v2815_v16 = vpop.trf.xlu0 }
 0x998   : > { %1958 = vrot.lane.b32.xlu1 %v5263_v30, %s4536_s30 }
 0x99c   : > { %2773 = vrot.lane.b32.xlu1 %v5616_v37, %s4536_s30 }
 0x9fa   : > { %v2763_v33 = vpop.permute.xlu1 %2762 }
 0x9fb   : > { %2766 = vst.msk [vmem:[#allocation2] sm:$0xff] %vm2765_vm12, %v2763_v33 }
 0x9fe   : > { %v2769_v14 = vpop.permute.xlu1 %2768 }
 0x9ff   : > { %v2771_v22 = vmul.f32 %v2769_v14, %v2758_v38 }
 0xa01   : > { %2783 = vrot.lane.b32.xlu1 %v2771_v22, %s4537_s19 }
 0xa02   : > { %v2779_v30 = vpop.permute.xlu1 %2778  ;;  %v2798_v37 = vld [vmem:[#allocation2] sm:$0xff] }
 0xa03   : > { %v2781_v27 = vmul.f32 %v2779_v30, %v2758_v38  ;;  %3658 = vmatpush3.msra.mxu1 %v2798_v37 }
 0xa04   : > { %3660 = vmatmul.mubr.msk.f32.vlgmr.msra.gmra.mrb[22].mxu1 %vm2831_vm13, %v2815_v16 }
 0xa05   : > { %2787 = vrot.lane.b32.xlu1 %v2781_v27, %s4536_s30 }
 0xa06   : > { %v1949_v29 = vpop.permute.xlu1 %1948 }
 0xa07   : > { %v1951_v40 = vmul.f32 %v1949_v29, %v5568_v11 }
 0xa09   : > { %1953 = vrot.lane.b32.xlu1 %v5261_v17, %s4536_s30  ;;  %1963 = vrot.lane.b32.xlu0 %v1951_v40, %s4537_s19  ;;  %s4416_s19 = sshll.u32 %s4539_s22, 4  ;;  %s4417_s19 = int_to_ptr.vmem [resolvable:$false] %s4416_s19 }
 0xa0a   : > { %v1959_v41 = vpop.permute.xlu1 %1958  ;;  %p4419_p8 = scmp.lt.s32.totalorder %s5725_s27, %s4417_s19 }
 0xa0b   : > { %v1961_v0 = vmul.f32 %v1959_v41, %v5568_v11 }
 0xa0d   : > { %1967 = vrot.lane.b32.xlu1 %v1961_v0, %s4536_s30  ;;  %s4412_s30 = scalar_lea.vmem %s5725_s27, 32 }
 0xa0e   : > { %v2774_v42 = vpop.permute.xlu1 %2773  ;;  %p4413_p2 = scmp.ne.s32.totalorder %s5725_s27, %s4412_s30 }
 0xa0f   : > { %v2776_v4 = vmul.f32 %v2774_v42, %v2758_v38 }
 0xa10   : > { %p4414_p4 = pnand %p4413_p2, %p5859_p3 }
 0xa12   : > { %p4415_p7 = pneg %p4414_p4 }
 0xa73   : > { %v2784_v34 = vpop.permute.xlu1 %2783 }
 0xa74   : > { %v2790_v44 = vsel %vm1945_vm8, %v2784_v34, %v2776_v4 }
 0xa77   : > { %v2788_v28 = vpop.permute.xlu1 %2787 }
 0xa78   : > { %v2791_v46 = vsel %vm1971_vm14, %v2790_v44, %v2788_v28 }
 0xa79   : > { %2793 = vrot.lane.b32.xlu1 %v2791_v46, %s4538_s15  ;;  %s4418_s15 = scalar_lea.vmem %s4417_s19, 64 }
 0xa7a   : > { %p4420_p11 = scmp.lt.s32.totalorder %s4418_s15, %s4412_s30 }
 0xa7b   : > { %v1954_v17 = vpop.permute.xlu1 %1953  ;;  %v1964_v13 = vpop.permute.xlu0 %1963 }
 0xa7c   : > { %v1956_v47 = vmul.f32 %v1954_v17, %v5568_v11  ;;  %p4421_p13 = por %p4420_p11, %p4419_p8 }
 0xa7e   : > { %v1970_v21 = vsel %vm1945_vm8, %v1964_v13, %v1956_v47  ;;  %p4422_p5 = pnand %p4421_p13, %p4415_p7 }
 0xa7f   : > { %v1968_v32 = vpop.permute.xlu1 %1967 }
 0xa80   : > { %v1972_v35 = vsel %vm1971_vm14, %v1970_v21, %v1968_v32 }
 0xa81   : > { %1974 = vst.msk [vmem:[%s5704_s18] sm:$0xff] %vm1973_vm15, %v1972_v35 }
 0xad7   : > { %v2901_v11 = vpop.f32.mrb[22].mxu1 }
 0xad8   : > { %2906 = vst.msk [vmem:[%s601_s24] sm:$0x3] %vm2905_vm0, %v2901_v11  ;;  %v3661_v36 = vpop.f32.mrb[23].mxu1 }
 0xad9   : > { %4425 = shalt.err (!%p4422_p5)
}
 0xada   : > { %s4426_s0 = scalar_lea.hbm %s5723_s20, 32  ;;  %s4430_s17 = scalar_lea.hbm %s5858_s26, 64 }
 0xadb   : > { %p4427_p0 = scmp.ne.s32.totalorder %s5723_s20, %s4426_s0  ;;  %p4431_p10 = scmp.lt.u32.totalorder %s5723_s20, %s5858_s26 }
 0xadc   : > { %p4432_p12 = scmp.lt.u32.totalorder %s4430_s17, %s4426_s0  ;;  %p4434_p2 = scmp.lt.u32.totalorder %s4426_s0, %s5723_s20 }
 0xadd   : > { %p4428_p6 = pnand %p4427_p0, %p5859_p3 }
 0xade   : > { %p4433_p1 = por %p4432_p12, %p4431_p10 }
 0xadf   : > { %p4429_p9 = pneg %p4428_p6 }
 0xae0   : > { %p4435_p4 = por %p4434_p2, %p4433_p1 }
 0xae2   : > { %p4436_p7 = pnand %p4435_p4, %p4429_p9 }
 0xae4   : > { %4439 = shalt.err (!%p4436_p7)
}
 0xae5   : > { %4182 = dma.vmem_to_hbm [thread:$0]  (%p5859_p3), %s5725_s27, 32, %s5723_s20, %s2908_s29   ;;  %vm2796_vm1 = vcmask 48152  }
 0xae6   : > { %s3236_s30 = sshll.u32 %s4647_s25, 7  ;;  %s2939_s22 = sshll.u32 %s5704_s18, 4  ;;  %s5756_s22 = int_to_ptr.vmem [resolvable:$true] %s2939_s22 }
 0xae7   : > { %s5860_s21 = sld [smem:[#allocation30_spill]]  ;;  %s2913_s24 = scalar_lea.sflag [#allocation13], %s5701_s4 }
 0xae8   : > { %s4440_s28 = scalar_lea.vmem %s5756_s22, 128  ;;  %s4540_s25 = smov [#allocation12]  }
 0xae9   : > { %p4441_p8 = scmp.ne.s32.totalorder %s5756_s22, %s4440_s28  ;;  %s4444_s27 = sshll.u32 %s4540_s25, 4  ;;  %s4445_s27 = int_to_ptr.vmem [resolvable:$false] %s4444_s27 }
 0xaea   : > { %s4446_s20 = scalar_lea.vmem %s4445_s27, 256  ;;  %p4447_p5 = scmp.lt.s32.totalorder %s5756_s22, %s4445_s27 }
 0xaeb   : > { %v2794_v39 = vpop.permute.xlu1 %2793  ;;  %p4442_p11 = pnand %p4441_p8, %p5859_p3  ;;  %p4448_p0 = scmp.lt.s32.totalorder %s4446_s20, %s4440_s28 }
 0xaec   : > { %2797 = vst.msk [vmem:[%s5704_s18] sm:$0xff] %vm2796_vm1, %v2794_v39 }
 0xaed   : > { %s5861_s17 = smov %s5860_s21  ;;  %s5754_s0 = scalar_lea.hbm %s5860_s21, %s3236_s30 }
 0xaee   : > { %p4443_p13 = pneg %p4442_p11  ;;  %p4449_p6 = por %p4448_p0, %p4447_p5 }
 0xaf0   : > { %p4450_p9 = pnand %p4449_p6, %p4443_p13 }
 0xaf2   : > { %4453 = shalt.err (!%p4450_p9)
}
 0xaf3   : > { %s4454_s4 = scalar_lea.hbm %s5754_s0, 128  ;;  %s4458_s23 = scalar_lea.hbm %s5861_s17, 256 }
 0xaf4   : > { %p4455_p10 = scmp.ne.s32.totalorder %s5754_s0, %s4454_s4  ;;  %p4459_p2 = scmp.lt.u32.totalorder %s5754_s0, %s5861_s17 }
 0xaf5   : > { %p4460_p4 = scmp.lt.u32.totalorder %s4458_s23, %s4454_s4  ;;  %p4462_p8 = scmp.lt.u32.totalorder %s4454_s4, %s5754_s0 }
 0xaf6   : > { %p4456_p12 = pnand %p4455_p10, %p5859_p3 }
 0xaf7   : > { %p4461_p7 = por %p4460_p4, %p4459_p2 }
 0xaf8   : > { %p4457_p1 = pneg %p4456_p12 }
 0xaf9   : > { %p4463_p11 = por %p4462_p8, %p4461_p7 }
 0xafb   : > { %p4464_p13 = pnand %p4463_p11, %p4457_p1 }
 0xafd   : > { %4467 = shalt.err (!%p4464_p13)
}
 0xafe   : > { %4183 = dma.vmem_to_hbm [thread:$0]  (%p5859_p3), %s5756_s22, 128, %s5754_s0, %s2913_s24  }
 0xaff PF: > { %s5862_s15 = sld [smem:[#allocation22_spill]]  ;;  %s5863_s21 = sld [smem:[#allocation19_spill]] }
 0xb00   : > { %s5864_s28 = sld [smem:[#allocation26_spill]] }
 0xb05   : > { %p4214_p5 = scmp.ge.s32.totalorder %s5862_s15, 2  ;;  %s2951_s25 = sand.u32 1, %s5863_s21  }
 0xb06   : > { %p5865_p0 = scmp.ne.s32.totalorder %s5864_s28, 0  ;;  %s2952_s27 = scalar_lea.sflag [#allocation5], %s2951_s25 }
 0xb08   : > { %p4200_p6 = pnand %p4214_p5, %p5865_p0 }
 0xb0a   : > { %4497 = dma.done.wait (!%p4200_p6), %s2952_s27, 32  }
 0xb0b   : > { %4499 = vsyncadd (!%p4200_p6), %s2952_s27, 4294967264  ;;  %s2961_s20 = scalar_lea.sflag [#allocation13], %s2951_s25 }
 0xb0c   : > { %4501 = dma.done.wait (!%p4200_p6), %s2961_s20, 128  }
 0xb0d   : > { %4503 = vsyncadd (!%p4200_p6), %s2961_s20, 4294967168  ;;  %s5866_s24 = sld [smem:[#allocation23_spill]]  ;;  %s5867_s21 = sld [smem:[#allocation20_spill]] }
 0xb0e   : > { %s5868_s22 = sld [smem:[#allocation21_spill]]  ;;  %s5869_s23 = sld [smem:[#allocation24_spill]] }
 0xb13   : > { %p33_p3 = scmp.ge.s32.totalorder %s5866_s24, 4  }
 0xb15   :  { %35 = sbr.rel (!%p33_p3) target bundleno = 13 (0xd), region = 165 }
 0xb1c   :  { %2966 = vsyncpa [#allocation4], 1 }
 0xb1d   :  { %2968 = vsyncpa [#allocation4 + $0x1], 1 }
 0xb1e   :  { %2969 = vsyncpa [#allocation7], 1 }
 0xb1f   :  { %2970 = vsyncpa [#allocation10], 1 }
 0xb20   :  { %2971 = vsyncpa [#allocation5], 1 }
 0xb21   :  { %2973 = vsyncpa [#allocation5 + $0x1], 1 }
 0xb22   :  { %2974 = vsyncpa [#allocation13], 1 }
 0xb23   :  { %2976 = vsyncpa [#allocation13 + $0x1], 1 }

</bundles_post_ra>
